<compile_context>
chip_gen: v7x
topology: tpu7x:2x2x1
jax: 0.10.0
libtpu: 0.0.40
codegen_flags: <defaults>
</compile_context>

<pallas_src>
import functools

import jax
import jax.numpy as jnp
from jax import lax
from jax.experimental import pallas as pl
from jax.experimental.pallas import tpu as pltpu

LN_EPS = 1e-5          # PyTorch nn.LayerNorm default
FFN_CHUNK = 1024       # chunk of the FFN hidden dim kept live at once


def _layernorm(x, gamma, beta):
    mu = jnp.mean(x, axis=-1, keepdims=True)
    var = jnp.mean((x - mu) ** 2, axis=-1, keepdims=True)
    return (x - mu) * lax.rsqrt(var + LN_EPS) * gamma + beta


def transformer_encoder_kernel(
    x_ref,
    ln1_g_ref, ln1_b_ref,
    wqkv_ref, bqkv_ref,
    wout_ref, bout_ref,
    ln2_g_ref, ln2_b_ref,
    w1_ref, b1_ref,
    w2_ref, b2_ref,
    o_ref,
    *scratch,
    num_heads, embed_dim, n_patches, b_tile, ffn_dim, use_transpose,
):
    H, C, P, B, F = num_heads, embed_dim, n_patches, b_tile, ffn_dim
    D = C // H
    BH = B * H
    R = B * P
    f32, bf16 = jnp.float32, jnp.bfloat16

    if use_transpose:
        y2_s, acc_s = scratch
    else:
        q_s, k_s, v_s, ctx_s, y2_s, acc_s = scratch

    # ---- pre_norm_mha: LayerNorm -> fused QKV projection (one MXU matmul) ----
    x = x_ref[...].astype(f32)                                    # (R, C)
    y = _layernorm(x, ln1_g_ref[...], ln1_b_ref[...])
    # NOTE: 1/sqrt(D) is pre-folded into the Q columns of wqkv/bqkv host-side.
    qkv = jnp.dot(y.astype(bf16), wqkv_ref[...],
                  preferred_element_type=f32) + bqkv_ref[...]     # (R, 3C) f32

    if use_transpose:
        # Head split via one bf16 reshape+transpose (XLU relayout, no stores).
        qkv5 = qkv.astype(bf16).reshape(B, P, 3, H, D)
        qkv5 = jnp.transpose(qkv5, (2, 0, 3, 1, 4)).reshape(3, BH, P, D)
        q, k, v = qkv5[0], qkv5[1], qkv5[2]
    else:
        # Conservative fallback: stage per-(batch, head) tiles into bf16 scratch.
        for b in range(B):                                        # static, small
            r0 = b * P
            for h in range(H):
                i = b * H + h
                c0 = h * D
                q_s[i] = qkv[r0:r0 + P, c0:c0 + D].astype(bf16)
                k_s[i] = qkv[r0:r0 + P, C + c0:C + c0 + D].astype(bf16)
                v_s[i] = qkv[r0:r0 + P, 2 * C + c0:2 * C + c0 + D].astype(bf16)
        q, k, v = q_s[...], k_s[...], v_s[...]

    # Batched attention over all (batch, head) pairs: one MXU stream per matmul.
    # TODO(synk): query/key-block tiling with online softmax once P grows past a
    # few hundred (scores are (BH, P, P) and become the dominant VMEM consumer).
    s = jnp.einsum("bqd,bkd->bqk", q, k,
                   preferred_element_type=f32)                    # (BH, P, P)
    m = jnp.max(s, axis=-1, keepdims=True)
    e = jnp.exp(s - m)                                            # f32 (v5e-safe)
    inv = pl.reciprocal(jnp.sum(e, axis=-1, keepdims=True), approx=True)
    ctx = jnp.einsum("bqk,bkd->bqd", e.astype(bf16), v,
                     preferred_element_type=f32)                  # (BH, P, D)
    ctx = ctx * inv                                               # deferred softmax norm

    if use_transpose:
        ctx2d = jnp.transpose(ctx.astype(bf16).reshape(B, H, P, D),
                              (0, 2, 1, 3)).reshape(R, C)
    else:
        ctx_bf = ctx.astype(bf16)
        for b in range(B):
            r0 = b * P
            for h in range(H):
                ctx_s[pl.ds(r0, P), pl.ds(h * D, D)] = ctx_bf[b * H + h]
        ctx2d = ctx_s[...]

    attn_out = jnp.dot(ctx2d, wout_ref[...],
                       preferred_element_type=f32) + bout_ref[...]

    # ---- residual 1 + pre_norm_ffn (LayerNorm -> Linear -> SiLU -> Linear) ----
    x1 = x_ref[...].astype(f32) + attn_out                        # residual 1
    y2_s[...] = _layernorm(x1, ln2_g_ref[...], ln2_b_ref[...]).astype(bf16)
    acc_s[...] = x1 + b2_ref[...]           # residual 2 base + final FFN bias

    chunk = min(F, FFN_CHUNK)
    n_chunks = (F + chunk - 1) // chunk

    def ffn_chunk(f0, csz):
        h1 = jnp.dot(y2_s[...], w1_ref[:, pl.ds(f0, csz)],
                     preferred_element_type=f32) + b1_ref[:, pl.ds(f0, csz)]
        h1 = h1 * jax.nn.sigmoid(h1)                              # SiLU
        acc_s[...] += jnp.dot(h1.astype(bf16), w2_ref[pl.ds(f0, csz), :],
                              preferred_element_type=f32)

    if F % chunk == 0 and n_chunks > 4:
        # Many chunks: keep trace size / live ranges bounded with a real loop.
        @pl.loop(0, n_chunks)
        def _(i):
            ffn_chunk(pl.multiple_of(i * chunk, chunk), chunk)
    else:
        for idx in range(n_chunks):                               # static, few chunks
            ffn_chunk(idx * chunk, min(chunk, F - idx * chunk))

    o_ref[...] = acc_s[...].astype(o_ref.dtype)


def _pick_vmem_limit():
    # Generation-aware VMEM budget: ~cap-12MiB on v7x (64 MiB), up to 112 MiB
    # on v5e/v6e (128 MiB).  Falls back to a conservative 48 MiB.
    try:
        cap = int(pltpu.get_tpu_info().vmem_capacity_bytes)
        return max(32 << 20, min(cap - (12 << 20), 112 << 20))
    except Exception:
        return 48 << 20


def transformer_encoder(x, params, *, num_heads, b_tile=1, vmem_limit_bytes=None):
    N, P, C = x.shape
    F = params["w1_t"].shape[1]
    assert C % num_heads == 0
    assert N % b_tile == 0
    # NOTE: keep N // b_tile >= 2 (and even) on v7x so both TensorCores get work.
    R = b_tile * P              # rows per grid step
    D = C // num_heads
    BH = b_tile * num_heads
    scaling = D ** (-0.5)

    # Fold the 1/sqrt(D) query scaling into the Q columns of the fused QKV
    # projection (done once host-side, in f32, then cast back to bf16).
    wqkv = params["wqkv_t"]
    wqkv_scaled = jnp.concatenate(
        [(wqkv[:, :C].astype(jnp.float32) * scaling).astype(wqkv.dtype),
         wqkv[:, C:]], axis=1)
    bqkv_scaled = params["bqkv"].at[:, :C].multiply(scaling)

    x2d = x.reshape(N * P, C)   # lane-dense row stream; reshaped back afterwards

    param_arrays = [
        params["ln1_g"], params["ln1_b"],
        wqkv_scaled, bqkv_scaled,
        params["wout_t"], params["bout"],
        params["ln2_g"], params["ln2_b"],
        params["w1_t"], params["b1"],
        params["w2_t"], params["b2"],
    ]

    if vmem_limit_bytes is None:
        vmem_limit_bytes = _pick_vmem_limit()

    def build_and_run(use_transpose, single_buffer_params):
        def param_spec(arr):
            # Whole (un-tiled) parameter with a constant block index; optionally
            # single-buffered since the block never changes across the grid.
            nd = arr.ndim
            kwargs = {}
            if single_buffer_params:
                kwargs["pipeline_mode"] = pl.Buffered(buffer_count=1)
            return pl.BlockSpec(arr.shape, lambda i, _nd=nd: (0,) * _nd, **kwargs)

        scratch = []
        if not use_transpose:
            scratch += [pltpu.VMEM((BH, P, D), jnp.bfloat16)] * 3   # q/k/v heads
            scratch += [pltpu.VMEM((R, C), jnp.bfloat16)]           # ctx slab
        scratch += [pltpu.VMEM((R, C), jnp.bfloat16),               # post-LN2 acts
                    pltpu.VMEM((R, C), jnp.float32)]                # FFN/residual acc

        kernel = functools.partial(
            transformer_encoder_kernel,
            num_heads=num_heads, embed_dim=C, n_patches=P,
            b_tile=b_tile, ffn_dim=F, use_transpose=use_transpose)

        return pl.pallas_call(
            kernel,
            out_shape=jax.ShapeDtypeStruct((N * P, C), x.dtype),
            grid_spec=pltpu.PrefetchScalarGridSpec(
                num_scalar_prefetch=0,
                grid=(N // b_tile,),
                in_specs=[pl.BlockSpec((R, C), lambda i: (i, 0))]
                         + [param_spec(a) for a in param_arrays],
                out_specs=pl.BlockSpec((R, C), lambda i: (i, 0)),
                scratch_shapes=scratch),
            compiler_params=pltpu.CompilerParams(
                dimension_semantics=("parallel",),
                vmem_limit_bytes=vmem_limit_bytes),
        )(x2d, *param_arrays)

    # Preferred config first; fall back to progressively more conservative
    # variants if a lowering feature is unavailable on this JAX/TPU combo.
    last_err = None
    for use_transpose, single_buf in ((True, True), (True, False), (False, False)):
        try:
            out2d = build_and_run(use_transpose, single_buf)
            break
        except Exception as e:   # noqa: BLE001 - deliberate lowering fallback
            last_err = e
    else:
        raise last_err

    return out2d.reshape(N, P, C)


def init_params(key, embed_dim, ffn_dim):
    ks = jax.random.split(key, 5)
    s = 0.02
    C, F = embed_dim, ffn_dim
    f32, bf16 = jnp.float32, jnp.bfloat16
    return {
        # LayerNorm 1
        "ln1_g": jnp.ones((1, C), f32),
        "ln1_b": jnp.zeros((1, C), f32),
        # qkv_proj: y = x @ W^T + b  (store transposed weight, bf16 for the MXU)
        "wqkv_t": (jax.random.normal(ks[0], (C, 3 * C), f32) * s).astype(bf16),
        "bqkv": (jax.random.normal(ks[1], (1, 3 * C), f32) * s),
        # out_proj
        "wout_t": (jax.random.normal(ks[2], (C, C), f32) * s).astype(bf16),
        "bout": jnp.zeros((1, C), f32),
        # LayerNorm 2
        "ln2_g": jnp.ones((1, C), f32),
        "ln2_b": jnp.zeros((1, C), f32),
        # FFN
        "w1_t": (jax.random.normal(ks[3], (C, F), f32) * s).astype(bf16),
        "b1": jnp.zeros((1, F), f32),
        "w2_t": (jax.random.normal(ks[4], (F, C), f32) * s).astype(bf16),
        "b2": jnp.zeros((1, C), f32),
    }


def reference_forward(x, params, *, num_heads):
    # Pure-JAX f32 reference matching the PyTorch module (dropout = identity).
    C = x.shape[-1]
    D = C // num_heads
    scaling = D ** (-0.5)
    f32 = jnp.float32

    def ln(v, g, b):
        mu = jnp.mean(v, -1, keepdims=True)
        var = jnp.mean((v - mu) ** 2, -1, keepdims=True)
        return (v - mu) / jnp.sqrt(var + LN_EPS) * g + b

    wqkv = params["wqkv_t"].astype(f32)
    wout = params["wout_t"].astype(f32)
    w1 = params["w1_t"].astype(f32)
    w2 = params["w2_t"].astype(f32)

    y = ln(x, params["ln1_g"], params["ln1_b"])
    qkv = y @ wqkv + params["bqkv"]                                # (N, P, 3C)
    N, P, _ = qkv.shape
    qkv = qkv.reshape(N, P, 3, num_heads, D).transpose(0, 3, 2, 1, 4)  # (N,H,3,P,D)
    q, k, v = qkv[:, :, 0] * scaling, qkv[:, :, 1], qkv[:, :, 2]
    attn = jax.nn.softmax(jnp.einsum("nhpd,nhqd->nhpq", q, k), axis=-1)
    out = jnp.einsum("nhpq,nhqd->nhpd", attn, v)
    out = out.transpose(0, 2, 1, 3).reshape(N, P, C)
    out = out @ wout + params["bout"]
    x1 = x + out
    y2 = ln(x1, params["ln2_g"], params["ln2_b"])
    h1 = y2 @ w1 + params["b1"]
    h1 = h1 * jax.nn.sigmoid(h1)
    return x1 + (h1 @ w2 + params["b2"])


if __name__ == "__main__":
    N, P, C = 2, 8, 32        # batch, patches, embed_dim
    FFN = 64
    HEADS = 4

    key = jax.random.PRNGKey(0)
    kx, kp = jax.random.split(key)
    x = jax.random.normal(kx, (N, P, C), dtype=jnp.float32)
    params = init_params(kp, C, FFN)

    ref = reference_forward(x, params, num_heads=HEADS)

    # b_tile=1: grid of N steps (keeps both v7x TensorCores busy);
    # b_tile=2: two batch elements per grid step (more rows per MXU pass).
    for b_tile in (1, 2):
        out = transformer_encoder(x, params, num_heads=HEADS, b_tile=b_tile)
        out = jax.block_until_ready(out)
        assert out.shape == (N, P, C)
        err = float(jnp.max(jnp.abs(out - ref)))
        assert jnp.allclose(out, ref, atol=1e-2, rtol=1e-2), err

    print("KERNEL_OK")
</pallas_src>

<mosaic_0001>
module attributes {stable_mosaic.version = 11 : i64} {
  func.func @transformer_encoder_kernel(%arg0: i32, %arg1: memref<8x32xf32, #tpu.memory_space<vmem>>, %arg2: memref<1x32xf32, #tpu.memory_space<vmem>>, %arg3: memref<1x32xf32, #tpu.memory_space<vmem>>, %arg4: memref<32x96xbf16, #tpu.memory_space<vmem>>, %arg5: memref<1x96xf32, #tpu.memory_space<vmem>>, %arg6: memref<32x32xbf16, #tpu.memory_space<vmem>>, %arg7: memref<1x32xf32, #tpu.memory_space<vmem>>, %arg8: memref<1x32xf32, #tpu.memory_space<vmem>>, %arg9: memref<1x32xf32, #tpu.memory_space<vmem>>, %arg10: memref<32x64xbf16, #tpu.memory_space<vmem>>, %arg11: memref<1x64xf32, #tpu.memory_space<vmem>>, %arg12: memref<64x32xbf16, #tpu.memory_space<vmem>>, %arg13: memref<1x32xf32, #tpu.memory_space<vmem>>, %arg14: memref<8x32xf32, #tpu.memory_space<vmem>>, %arg15: memref<8x32xbf16, #tpu.memory_space<vmem>>, %arg16: memref<8x32xf32, #tpu.memory_space<vmem>>) attributes {dimension_semantics = [#tpu.dimension_semantics<parallel>], iteration_bounds = array<i64: 2>, scalar_prefetch = 0 : i64, scratch_operands = 2 : i64, tpu.core_type = #tpu.core_type<tc>, window_params = [{transform_indices = @transform_0, window_bounds = array<i64: 8, 32>}, {pipeline_mode = #tpu.pipeline_mode<synchronous>, transform_indices = @transform_1, window_bounds = array<i64: 1, 32>}, {pipeline_mode = #tpu.pipeline_mode<synchronous>, transform_indices = @transform_2, window_bounds = array<i64: 1, 32>}, {pipeline_mode = #tpu.pipeline_mode<synchronous>, transform_indices = @transform_3, window_bounds = array<i64: 32, 96>}, {pipeline_mode = #tpu.pipeline_mode<synchronous>, transform_indices = @transform_4, window_bounds = array<i64: 1, 96>}, {pipeline_mode = #tpu.pipeline_mode<synchronous>, transform_indices = @transform_5, window_bounds = array<i64: 32, 32>}, {pipeline_mode = #tpu.pipeline_mode<synchronous>, transform_indices = @transform_6, window_bounds = array<i64: 1, 32>}, {pipeline_mode = #tpu.pipeline_mode<synchronous>, transform_indices = @transform_7, window_bounds = array<i64: 1, 32>}, {pipeline_mode = #tpu.pipeline_mode<synchronous>, transform_indices = @transform_8, window_bounds = array<i64: 1, 32>}, {pipeline_mode = #tpu.pipeline_mode<synchronous>, transform_indices = @transform_9, window_bounds = array<i64: 32, 64>}, {pipeline_mode = #tpu.pipeline_mode<synchronous>, transform_indices = @transform_10, window_bounds = array<i64: 1, 64>}, {pipeline_mode = #tpu.pipeline_mode<synchronous>, transform_indices = @transform_11, window_bounds = array<i64: 64, 32>}, {pipeline_mode = #tpu.pipeline_mode<synchronous>, transform_indices = @transform_12, window_bounds = array<i64: 1, 32>}, {transform_indices = @transform_13, window_bounds = array<i64: 8, 32>}]} {
    %c0 = arith.constant 0 : index
    %c0_0 = arith.constant 0 : index
    %0 = vector.load %arg1[%c0, %c0_0] : memref<8x32xf32, #tpu.memory_space<vmem>>, vector<8x32xf32>
    %c0_1 = arith.constant 0 : index
    %c0_2 = arith.constant 0 : index
    %1 = vector.load %arg2[%c0_1, %c0_2] : memref<1x32xf32, #tpu.memory_space<vmem>>, vector<1x32xf32>
    %c0_3 = arith.constant 0 : index
    %c0_4 = arith.constant 0 : index
    %2 = vector.load %arg3[%c0_3, %c0_4] : memref<1x32xf32, #tpu.memory_space<vmem>>, vector<1x32xf32>
    %cst = arith.constant dense<0.000000e+00> : vector<8xf32>
    %3 = vector.multi_reduction <add>, %0, %cst [1] : vector<8x32xf32> to vector<8xf32>
    %4 = vector.shape_cast %3 : vector<8xf32> to vector<8x1xf32>
    %cst_5 = arith.constant 3.200000e+01 : f32
    %5 = vector.broadcast %cst_5 : f32 to vector<8x1xf32>
    %6 = arith.divf %4, %5 : vector<8x1xf32>
    %7 = vector.broadcast %6 : vector<8x1xf32> to vector<8x32xf32>
    %8 = arith.subf %0, %7 : vector<8x32xf32>
    %9 = arith.mulf %8, %8 : vector<8x32xf32>
    %cst_6 = arith.constant dense<0.000000e+00> : vector<8xf32>
    %10 = vector.multi_reduction <add>, %9, %cst_6 [1] : vector<8x32xf32> to vector<8xf32>
    %11 = vector.shape_cast %10 : vector<8xf32> to vector<8x1xf32>
    %cst_7 = arith.constant 3.200000e+01 : f32
    %12 = vector.broadcast %cst_7 : f32 to vector<8x1xf32>
    %13 = arith.divf %11, %12 : vector<8x1xf32>
    %14 = vector.broadcast %6 : vector<8x1xf32> to vector<8x32xf32>
    %15 = arith.subf %0, %14 : vector<8x32xf32>
    %cst_8 = arith.constant 9.99999974E-6 : f32
    %16 = vector.broadcast %cst_8 : f32 to vector<8x1xf32>
    %17 = arith.addf %13, %16 : vector<8x1xf32>
    %18 = math.rsqrt %17 : vector<8x1xf32>
    %19 = vector.broadcast %18 : vector<8x1xf32> to vector<8x32xf32>
    %20 = arith.mulf %15, %19 : vector<8x32xf32>
    %21 = vector.broadcast %1 : vector<1x32xf32> to vector<8x32xf32>
    %22 = arith.mulf %20, %21 : vector<8x32xf32>
    %23 = vector.broadcast %2 : vector<1x32xf32> to vector<8x32xf32>
    %24 = arith.addf %22, %23 : vector<8x32xf32>
    %25 = arith.truncf %24 : vector<8x32xf32> to vector<8x32xbf16>
    %c0_9 = arith.constant 0 : index
    %c0_10 = arith.constant 0 : index
    %26 = vector.load %arg4[%c0_9, %c0_10] : memref<32x96xbf16, #tpu.memory_space<vmem>>, vector<32x96xbf16>
    %cst_11 = arith.constant dense<0.000000e+00> : vector<8x96xf32>
    %27 = tpu.matmul %25, %26, %cst_11 {dimension_numbers = #tpu.dot_dimension_numbers<[1], [0], [0], [1], [0, 0, 1, 1], [], []>} : vector<8x32xbf16>, vector<32x96xbf16>, vector<8x96xf32> -> vector<8x96xf32>
    %c0_12 = arith.constant 0 : index
    %c0_13 = arith.constant 0 : index
    %28 = vector.load %arg5[%c0_12, %c0_13] : memref<1x96xf32, #tpu.memory_space<vmem>>, vector<1x96xf32>
    %29 = vector.broadcast %28 : vector<1x96xf32> to vector<8x96xf32>
    %30 = arith.addf %27, %29 : vector<8x96xf32>
    %31 = arith.truncf %30 : vector<8x96xf32> to vector<8x96xbf16>
    %32 = vector.shape_cast %31 : vector<8x96xbf16> to vector<1x8x3x4x8xbf16>
    %33 = tpu.transpose %32, [2, 0, 3, 1, 4] : vector<1x8x3x4x8xbf16> -> vector<3x1x4x8x8xbf16>
    %34 = vector.shape_cast %33 : vector<3x1x4x8x8xbf16> to vector<3x4x8x8xbf16>
    %35 = vector.extract_strided_slice %34 {offsets = [0, 0, 0, 0], sizes = [1, 4, 8, 8], strides = [1, 1, 1, 1]} : vector<3x4x8x8xbf16> to vector<1x4x8x8xbf16>
    %36 = vector.shape_cast %35 : vector<1x4x8x8xbf16> to vector<4x8x8xbf16>
    %37 = vector.extract_strided_slice %34 {offsets = [1, 0, 0, 0], sizes = [1, 4, 8, 8], strides = [1, 1, 1, 1]} : vector<3x4x8x8xbf16> to vector<1x4x8x8xbf16>
    %38 = vector.shape_cast %37 : vector<1x4x8x8xbf16> to vector<4x8x8xbf16>
    %39 = vector.extract_strided_slice %34 {offsets = [2, 0, 0, 0], sizes = [1, 4, 8, 8], strides = [1, 1, 1, 1]} : vector<3x4x8x8xbf16> to vector<1x4x8x8xbf16>
    %40 = vector.shape_cast %39 : vector<1x4x8x8xbf16> to vector<4x8x8xbf16>
    "tpu.trace_start"() <{level = 10 : i32, message = "bqd,bkd->bqk"}> : () -> ()
    %cst_14 = arith.constant dense<0.000000e+00> : vector<4x8x8xf32>
    %41 = tpu.matmul %36, %38, %cst_14 {dimension_numbers = #tpu.dot_dimension_numbers<[2], [2], [1], [1], [0, 0, 0, 1, 1, 1], [0], [0]>} : vector<4x8x8xbf16>, vector<4x8x8xbf16>, vector<4x8x8xf32> -> vector<4x8x8xf32>
    "tpu.trace_stop"() : () -> ()
    %cst_15 = arith.constant dense<0xFF800000> : vector<4x8xf32>
    %42 = vector.multi_reduction <maximumf>, %41, %cst_15 [2] : vector<4x8x8xf32> to vector<4x8xf32>
    %43 = vector.shape_cast %42 : vector<4x8xf32> to vector<4x8x1xf32>
    %44 = vector.broadcast %43 : vector<4x8x1xf32> to vector<4x8x8xf32>
    %45 = arith.subf %41, %44 : vector<4x8x8xf32>
    %46 = math.exp %45 : vector<4x8x8xf32>
    %cst_16 = arith.constant dense<0.000000e+00> : vector<4x8xf32>
    %47 = vector.multi_reduction <add>, %46, %cst_16 [2] : vector<4x8x8xf32> to vector<4x8xf32>
    %48 = vector.shape_cast %47 : vector<4x8xf32> to vector<4x8x1xf32>
    %49 = tpu.reciprocal %48 {approx = true} : vector<4x8x1xf32> -> vector<4x8x1xf32>
    %50 = arith.truncf %46 : vector<4x8x8xf32> to vector<4x8x8xbf16>
    "tpu.trace_start"() <{level = 10 : i32, message = "bqk,bkd->bqd"}> : () -> ()
    %cst_17 = arith.constant dense<0.000000e+00> : vector<4x8x8xf32>
    %51 = tpu.matmul %50, %40, %cst_17 {dimension_numbers = #tpu.dot_dimension_numbers<[2], [1], [1], [2], [0, 0, 0, 1, 1, 2], [0], [0]>} : vector<4x8x8xbf16>, vector<4x8x8xbf16>, vector<4x8x8xf32> -> vector<4x8x8xf32>
    "tpu.trace_stop"() : () -> ()
    %52 = vector.broadcast %49 : vector<4x8x1xf32> to vector<4x8x8xf32>
    %53 = arith.mulf %51, %52 : vector<4x8x8xf32>
    %54 = arith.truncf %53 : vector<4x8x8xf32> to vector<4x8x8xbf16>
    %55 = vector.shape_cast %54 : vector<4x8x8xbf16> to vector<1x4x8x8xbf16>
    %56 = tpu.transpose %55, [0, 2, 1, 3] : vector<1x4x8x8xbf16> -> vector<1x8x4x8xbf16>
    %57 = vector.shape_cast %56 : vector<1x8x4x8xbf16> to vector<8x32xbf16>
    %c0_18 = arith.constant 0 : index
    %c0_19 = arith.constant 0 : index
    %58 = vector.load %arg6[%c0_18, %c0_19] : memref<32x32xbf16, #tpu.memory_space<vmem>>, vector<32x32xbf16>
    %cst_20 = arith.constant dense<0.000000e+00> : vector<8x32xf32>
    %59 = tpu.matmul %57, %58, %cst_20 {dimension_numbers = #tpu.dot_dimension_numbers<[1], [0], [0], [1], [0, 0, 1, 1], [], []>} : vector<8x32xbf16>, vector<32x32xbf16>, vector<8x32xf32> -> vector<8x32xf32>
    %c0_21 = arith.constant 0 : index
    %c0_22 = arith.constant 0 : index
    %60 = vector.load %arg7[%c0_21, %c0_22] : memref<1x32xf32, #tpu.memory_space<vmem>>, vector<1x32xf32>
    %61 = vector.broadcast %60 : vector<1x32xf32> to vector<8x32xf32>
    %62 = arith.addf %59, %61 : vector<8x32xf32>
    %c0_23 = arith.constant 0 : index
    %c0_24 = arith.constant 0 : index
    %63 = vector.load %arg1[%c0_23, %c0_24] : memref<8x32xf32, #tpu.memory_space<vmem>>, vector<8x32xf32>
    %64 = arith.addf %63, %62 : vector<8x32xf32>
    %c0_25 = arith.constant 0 : index
    %c0_26 = arith.constant 0 : index
    %65 = vector.load %arg8[%c0_25, %c0_26] : memref<1x32xf32, #tpu.memory_space<vmem>>, vector<1x32xf32>
    %c0_27 = arith.constant 0 : index
    %c0_28 = arith.constant 0 : index
    %66 = vector.load %arg9[%c0_27, %c0_28] : memref<1x32xf32, #tpu.memory_space<vmem>>, vector<1x32xf32>
    %cst_29 = arith.constant dense<0.000000e+00> : vector<8xf32>
    %67 = vector.multi_reduction <add>, %64, %cst_29 [1] : vector<8x32xf32> to vector<8xf32>
    %68 = vector.shape_cast %67 : vector<8xf32> to vector<8x1xf32>
    %cst_30 = arith.constant 3.200000e+01 : f32
    %69 = vector.broadcast %cst_30 : f32 to vector<8x1xf32>
    %70 = arith.divf %68, %69 : vector<8x1xf32>
    %71 = vector.broadcast %70 : vector<8x1xf32> to vector<8x32xf32>
    %72 = arith.subf %64, %71 : vector<8x32xf32>
    %73 = arith.mulf %72, %72 : vector<8x32xf32>
    %cst_31 = arith.constant dense<0.000000e+00> : vector<8xf32>
    %74 = vector.multi_reduction <add>, %73, %cst_31 [1] : vector<8x32xf32> to vector<8xf32>
    %75 = vector.shape_cast %74 : vector<8xf32> to vector<8x1xf32>
    %cst_32 = arith.constant 3.200000e+01 : f32
    %76 = vector.broadcast %cst_32 : f32 to vector<8x1xf32>
    %77 = arith.divf %75, %76 : vector<8x1xf32>
    %78 = vector.broadcast %70 : vector<8x1xf32> to vector<8x32xf32>
    %79 = arith.subf %64, %78 : vector<8x32xf32>
    %cst_33 = arith.constant 9.99999974E-6 : f32
    %80 = vector.broadcast %cst_33 : f32 to vector<8x1xf32>
    %81 = arith.addf %77, %80 : vector<8x1xf32>
    %82 = math.rsqrt %81 : vector<8x1xf32>
    %83 = vector.broadcast %82 : vector<8x1xf32> to vector<8x32xf32>
    %84 = arith.mulf %79, %83 : vector<8x32xf32>
    %85 = vector.broadcast %65 : vector<1x32xf32> to vector<8x32xf32>
    %86 = arith.mulf %84, %85 : vector<8x32xf32>
    %87 = vector.broadcast %66 : vector<1x32xf32> to vector<8x32xf32>
    %88 = arith.addf %86, %87 : vector<8x32xf32>
    %89 = arith.truncf %88 : vector<8x32xf32> to vector<8x32xbf16>
    %c0_34 = arith.constant 0 : index
    %c0_35 = arith.constant 0 : index
    %90 = vector.load %arg15[%c0_34, %c0_35] : memref<8x32xbf16, #tpu.memory_space<vmem>>, vector<8x32xbf16>
    tpu.vector_store %arg15[%c0_34, %c0_35], %89 {strides = array<i32>} : memref<8x32xbf16, #tpu.memory_space<vmem>>, vector<8x32xbf16>,
    %c0_36 = arith.constant 0 : index
    %c0_37 = arith.constant 0 : index
    %91 = vector.load %arg13[%c0_36, %c0_37] : memref<1x32xf32, #tpu.memory_space<vmem>>, vector<1x32xf32>
    %92 = vector.broadcast %91 : vector<1x32xf32> to vector<8x32xf32>
    %93 = arith.addf %64, %92 : vector<8x32xf32>
    %c0_38 = arith.constant 0 : index
    %c0_39 = arith.constant 0 : index
    %94 = vector.load %arg16[%c0_38, %c0_39] : memref<8x32xf32, #tpu.memory_space<vmem>>, vector<8x32xf32>
    tpu.vector_store %arg16[%c0_38, %c0_39], %93 {strides = array<i32>} : memref<8x32xf32, #tpu.memory_space<vmem>>, vector<8x32xf32>,
    %c0_40 = arith.constant 0 : index
    %c0_41 = arith.constant 0 : index
    %95 = vector.load %arg15[%c0_40, %c0_41] : memref<8x32xbf16, #tpu.memory_space<vmem>>, vector<8x32xbf16>
    %c0_42 = arith.constant 0 : index
    %c0_43 = arith.constant 0 : index
    %96 = vector.load %arg10[%c0_42, %c0_43] : memref<32x64xbf16, #tpu.memory_space<vmem>>, vector<32x64xbf16>
    %cst_44 = arith.constant dense<0.000000e+00> : vector<8x64xf32>
    %97 = tpu.matmul %95, %96, %cst_44 {dimension_numbers = #tpu.dot_dimension_numbers<[1], [0], [0], [1], [0, 0, 1, 1], [], []>} : vector<8x32xbf16>, vector<32x64xbf16>, vector<8x64xf32> -> vector<8x64xf32>
    %c0_45 = arith.constant 0 : index
    %c0_46 = arith.constant 0 : index
    %98 = vector.load %arg11[%c0_45, %c0_46] : memref<1x64xf32, #tpu.memory_space<vmem>>, vector<1x64xf32>
    %99 = vector.broadcast %98 : vector<1x64xf32> to vector<8x64xf32>
    %100 = arith.addf %97, %99 : vector<8x64xf32>
    %101 = arith.negf %100 : vector<8x64xf32>
    %102 = math.exp %101 : vector<8x64xf32>
    %cst_47 = arith.constant 1.000000e+00 : f32
    %103 = vector.broadcast %cst_47 : f32 to vector<8x64xf32>
    %104 = arith.addf %103, %102 : vector<8x64xf32>
    %105 = arith.divf %103, %104 : vector<8x64xf32>
    %106 = arith.mulf %100, %105 : vector<8x64xf32>
    %c0_48 = arith.constant 0 : index
    %c0_49 = arith.constant 0 : index
    %107 = vector.load %arg16[%c0_48, %c0_49] : memref<8x32xf32, #tpu.memory_space<vmem>>, vector<8x32xf32>
    %108 = arith.truncf %106 : vector<8x64xf32> to vector<8x64xbf16>
    %c0_50 = arith.constant 0 : index
    %c0_51 = arith.constant 0 : index
    %109 = vector.load %arg12[%c0_50, %c0_51] : memref<64x32xbf16, #tpu.memory_space<vmem>>, vector<64x32xbf16>
    %cst_52 = arith.constant dense<0.000000e+00> : vector<8x32xf32>
    %110 = tpu.matmul %108, %109, %cst_52 {dimension_numbers = #tpu.dot_dimension_numbers<[1], [0], [0], [1], [0, 0, 1, 1], [], []>} : vector<8x64xbf16>, vector<64x32xbf16>, vector<8x32xf32> -> vector<8x32xf32>
    %111 = arith.addf %107, %110 : vector<8x32xf32>
    %c0_53 = arith.constant 0 : index
    %c0_54 = arith.constant 0 : index
    %112 = vector.load %arg16[%c0_53, %c0_54] : memref<8x32xf32, #tpu.memory_space<vmem>>, vector<8x32xf32>
    tpu.vector_store %arg16[%c0_53, %c0_54], %111 {strides = array<i32>} : memref<8x32xf32, #tpu.memory_space<vmem>>, vector<8x32xf32>,
    %c0_55 = arith.constant 0 : index
    %c0_56 = arith.constant 0 : index
    %113 = vector.load %arg16[%c0_55, %c0_56] : memref<8x32xf32, #tpu.memory_space<vmem>>, vector<8x32xf32>
    %c0_57 = arith.constant 0 : index
    %c0_58 = arith.constant 0 : index
    %114 = vector.load %arg14[%c0_57, %c0_58] : memref<8x32xf32, #tpu.memory_space<vmem>>, vector<8x32xf32>
    tpu.vector_store %arg14[%c0_57, %c0_58], %113 {strides = array<i32>} : memref<8x32xf32, #tpu.memory_space<vmem>>, vector<8x32xf32>,
    return
  }
  func.func @transform_0(%arg0: i32) -> (i32, i32) {
    %c0_i32 = arith.constant 0 : i32
    %c0_i32_0 = arith.constant 0 : i32
    return %arg0, %c0_i32 : i32, i32
  }
  func.func @transform_1(%arg0: i32) -> (i32, i32) {
    %c0_i32 = arith.constant 0 : i32
    %c0_i32_0 = arith.constant 0 : i32
    %c0_i32_1 = arith.constant 0 : i32
    return %c0_i32, %c0_i32_0 : i32, i32
  }
  func.func @transform_2(%arg0: i32) -> (i32, i32) {
    %c0_i32 = arith.constant 0 : i32
    %c0_i32_0 = arith.constant 0 : i32
    %c0_i32_1 = arith.constant 0 : i32
    return %c0_i32, %c0_i32_0 : i32, i32
  }
  func.func @transform_3(%arg0: i32) -> (i32, i32) {
    %c0_i32 = arith.constant 0 : i32
    %c0_i32_0 = arith.constant 0 : i32
    %c0_i32_1 = arith.constant 0 : i32
    return %c0_i32, %c0_i32_0 : i32, i32
  }
  func.func @transform_4(%arg0: i32) -> (i32, i32) {
    %c0_i32 = arith.constant 0 : i32
    %c0_i32_0 = arith.constant 0 : i32
    %c0_i32_1 = arith.constant 0 : i32
    return %c0_i32, %c0_i32_0 : i32, i32
  }
  func.func @transform_5(%arg0: i32) -> (i32, i32) {
    %c0_i32 = arith.constant 0 : i32
    %c0_i32_0 = arith.constant 0 : i32
    %c0_i32_1 = arith.constant 0 : i32
    return %c0_i32, %c0_i32_0 : i32, i32
  }
  func.func @transform_6(%arg0: i32) -> (i32, i32) {
    %c0_i32 = arith.constant 0 : i32
    %c0_i32_0 = arith.constant 0 : i32
    %c0_i32_1 = arith.constant 0 : i32
    return %c0_i32, %c0_i32_0 : i32, i32
  }
  func.func @transform_7(%arg0: i32) -> (i32, i32) {
    %c0_i32 = arith.constant 0 : i32
    %c0_i32_0 = arith.constant 0 : i32
    %c0_i32_1 = arith.constant 0 : i32
    return %c0_i32, %c0_i32_0 : i32, i32
  }
  func.func @transform_8(%arg0: i32) -> (i32, i32) {
    %c0_i32 = arith.constant 0 : i32
    %c0_i32_0 = arith.constant 0 : i32
    %c0_i32_1 = arith.constant 0 : i32
    return %c0_i32, %c0_i32_0 : i32, i32
  }
  func.func @transform_9(%arg0: i32) -> (i32, i32) {
    %c0_i32 = arith.constant 0 : i32
    %c0_i32_0 = arith.constant 0 : i32
    %c0_i32_1 = arith.constant 0 : i32
    return %c0_i32, %c0_i32_0 : i32, i32
  }
  func.func @transform_10(%arg0: i32) -> (i32, i32) {
    %c0_i32 = arith.constant 0 : i32
    %c0_i32_0 = arith.constant 0 : i32
    %c0_i32_1 = arith.constant 0 : i32
    return %c0_i32, %c0_i32_0 : i32, i32
  }
  func.func @transform_11(%arg0: i32) -> (i32, i32) {
    %c0_i32 = arith.constant 0 : i32
    %c0_i32_0 = arith.constant 0 : i32
    %c0_i32_1 = arith.constant 0 : i32
    return %c0_i32, %c0_i32_0 : i32, i32
  }
  func.func @transform_12(%arg0: i32) -> (i32, i32) {
    %c0_i32 = arith.constant 0 : i32
    %c0_i32_0 = arith.constant 0 : i32
    %c0_i32_1 = arith.constant 0 : i32
    return %c0_i32, %c0_i32_0 : i32, i32
  }
  func.func @transform_13(%arg0: i32) -> (i32, i32) {
    %c0_i32 = arith.constant 0 : i32
    %c0_i32_0 = arith.constant 0 : i32
    return %arg0, %c0_i32 : i32, i32
  }
}

module attributes {stable_mosaic.version = 11 : i64} {
  func.func @transformer_encoder_kernel(%arg0: i32, %arg1: memref<8x32xf32, #tpu.memory_space<vmem>>, %arg2: memref<1x32xf32, #tpu.memory_space<vmem>>, %arg3: memref<1x32xf32, #tpu.memory_space<vmem>>, %arg4: memref<32x96xbf16, #tpu.memory_space<vmem>>, %arg5: memref<1x96xf32, #tpu.memory_space<vmem>>, %arg6: memref<32x32xbf16, #tpu.memory_space<vmem>>, %arg7: memref<1x32xf32, #tpu.memory_space<vmem>>, %arg8: memref<1x32xf32, #tpu.memory_space<vmem>>, %arg9: memref<1x32xf32, #tpu.memory_space<vmem>>, %arg10: memref<32x64xbf16, #tpu.memory_space<vmem>>, %arg11: memref<1x64xf32, #tpu.memory_space<vmem>>, %arg12: memref<64x32xbf16, #tpu.memory_space<vmem>>, %arg13: memref<1x32xf32, #tpu.memory_space<vmem>>, %arg14: memref<8x32xf32, #tpu.memory_space<vmem>>, %arg15: memref<8x32xbf16, #tpu.memory_space<vmem>>, %arg16: memref<8x32xf32, #tpu.memory_space<vmem>>) attributes {dimension_semantics = [#tpu.dimension_semantics<parallel>], iteration_bounds = array<i64: 2>, scalar_prefetch = 0 : i64, scratch_operands = 2 : i64, tpu.core_type = #tpu.core_type<tc>, window_params = [{transform_indices = @transform_0, window_bounds = array<i64: 8, 32>}, {pipeline_mode = #tpu.pipeline_mode<synchronous>, transform_indices = @transform_1, window_bounds = array<i64: 1, 32>}, {pipeline_mode = #tpu.pipeline_mode<synchronous>, transform_indices = @transform_2, window_bounds = array<i64: 1, 32>}, {pipeline_mode = #tpu.pipeline_mode<synchronous>, transform_indices = @transform_3, window_bounds = array<i64: 32, 96>}, {pipeline_mode = #tpu.pipeline_mode<synchronous>, transform_indices = @transform_4, window_bounds = array<i64: 1, 96>}, {pipeline_mode = #tpu.pipeline_mode<synchronous>, transform_indices = @transform_5, window_bounds = array<i64: 32, 32>}, {pipeline_mode = #tpu.pipeline_mode<synchronous>, transform_indices = @transform_6, window_bounds = array<i64: 1, 32>}, {pipeline_mode = #tpu.pipeline_mode<synchronous>, transform_indices = @transform_7, window_bounds = array<i64: 1, 32>}, {pipeline_mode = #tpu.pipeline_mode<synchronous>, transform_indices = @transform_8, window_bounds = array<i64: 1, 32>}, {pipeline_mode = #tpu.pipeline_mode<synchronous>, transform_indices = @transform_9, window_bounds = array<i64: 32, 64>}, {pipeline_mode = #tpu.pipeline_mode<synchronous>, transform_indices = @transform_10, window_bounds = array<i64: 1, 64>}, {pipeline_mode = #tpu.pipeline_mode<synchronous>, transform_indices = @transform_11, window_bounds = array<i64: 64, 32>}, {pipeline_mode = #tpu.pipeline_mode<synchronous>, transform_indices = @transform_12, window_bounds = array<i64: 1, 32>}, {transform_indices = @transform_13, window_bounds = array<i64: 8, 32>}]} {
    %c0 = arith.constant 0 : index
    %c0_0 = arith.constant 0 : index
    %0 = vector.load %arg1[%c0, %c0_0] : memref<8x32xf32, #tpu.memory_space<vmem>>, vector<8x32xf32>
    %c0_1 = arith.constant 0 : index
    %c0_2 = arith.constant 0 : index
    %1 = vector.load %arg2[%c0_1, %c0_2] : memref<1x32xf32, #tpu.memory_space<vmem>>, vector<1x32xf32>
    %c0_3 = arith.constant 0 : index
    %c0_4 = arith.constant 0 : index
    %2 = vector.load %arg3[%c0_3, %c0_4] : memref<1x32xf32, #tpu.memory_space<vmem>>, vector<1x32xf32>
    %cst = arith.constant dense<0.000000e+00> : vector<8xf32>
    %3 = vector.multi_reduction <add>, %0, %cst [1] : vector<8x32xf32> to vector<8xf32>
    %4 = vector.shape_cast %3 : vector<8xf32> to vector<8x1xf32>
    %cst_5 = arith.constant 3.200000e+01 : f32
    %5 = vector.broadcast %cst_5 : f32 to vector<8x1xf32>
    %6 = arith.divf %4, %5 : vector<8x1xf32>
    %7 = vector.broadcast %6 : vector<8x1xf32> to vector<8x32xf32>
    %8 = arith.subf %0, %7 : vector<8x32xf32>
    %9 = arith.mulf %8, %8 : vector<8x32xf32>
    %cst_6 = arith.constant dense<0.000000e+00> : vector<8xf32>
    %10 = vector.multi_reduction <add>, %9, %cst_6 [1] : vector<8x32xf32> to vector<8xf32>
    %11 = vector.shape_cast %10 : vector<8xf32> to vector<8x1xf32>
    %cst_7 = arith.constant 3.200000e+01 : f32
    %12 = vector.broadcast %cst_7 : f32 to vector<8x1xf32>
    %13 = arith.divf %11, %12 : vector<8x1xf32>
    %14 = vector.broadcast %6 : vector<8x1xf32> to vector<8x32xf32>
    %15 = arith.subf %0, %14 : vector<8x32xf32>
    %cst_8 = arith.constant 9.99999974E-6 : f32
    %16 = vector.broadcast %cst_8 : f32 to vector<8x1xf32>
    %17 = arith.addf %13, %16 : vector<8x1xf32>
    %18 = math.rsqrt %17 : vector<8x1xf32>
    %19 = vector.broadcast %18 : vector<8x1xf32> to vector<8x32xf32>
    %20 = arith.mulf %15, %19 : vector<8x32xf32>
    %21 = vector.broadcast %1 : vector<1x32xf32> to vector<8x32xf32>
    %22 = arith.mulf %20, %21 : vector<8x32xf32>
    %23 = vector.broadcast %2 : vector<1x32xf32> to vector<8x32xf32>
    %24 = arith.addf %22, %23 : vector<8x32xf32>
    %25 = arith.truncf %24 : vector<8x32xf32> to vector<8x32xbf16>
    %c0_9 = arith.constant 0 : index
    %c0_10 = arith.constant 0 : index
    %26 = vector.load %arg4[%c0_9, %c0_10] : memref<32x96xbf16, #tpu.memory_space<vmem>>, vector<32x96xbf16>
    %cst_11 = arith.constant dense<0.000000e+00> : vector<8x96xf32>
    %27 = tpu.matmul %25, %26, %cst_11 {dimension_numbers = #tpu.dot_dimension_numbers<[1], [0], [0], [1], [0, 0, 1, 1], [], []>} : vector<8x32xbf16>, vector<32x96xbf16>, vector<8x96xf32> -> vector<8x96xf32>
    %c0_12 = arith.constant 0 : index
    %c0_13 = arith.constant 0 : index
    %28 = vector.load %arg5[%c0_12, %c0_13] : memref<1x96xf32, #tpu.memory_space<vmem>>, vector<1x96xf32>
    %29 = vector.broadcast %28 : vector<1x96xf32> to vector<8x96xf32>
    %30 = arith.addf %27, %29 : vector<8x96xf32>
    %31 = arith.truncf %30 : vector<8x96xf32> to vector<8x96xbf16>
    %32 = vector.shape_cast %31 : vector<8x96xbf16> to vector<1x8x3x4x8xbf16>
    %33 = tpu.transpose %32, [2, 0, 3, 1, 4] : vector<1x8x3x4x8xbf16> -> vector<3x1x4x8x8xbf16>
    %34 = vector.shape_cast %33 : vector<3x1x4x8x8xbf16> to vector<3x4x8x8xbf16>
    %35 = vector.extract_strided_slice %34 {offsets = [0, 0, 0, 0], sizes = [1, 4, 8, 8], strides = [1, 1, 1, 1]} : vector<3x4x8x8xbf16> to vector<1x4x8x8xbf16>
    %36 = vector.shape_cast %35 : vector<1x4x8x8xbf16> to vector<4x8x8xbf16>
    %37 = vector.extract_strided_slice %34 {offsets = [1, 0, 0, 0], sizes = [1, 4, 8, 8], strides = [1, 1, 1, 1]} : vector<3x4x8x8xbf16> to vector<1x4x8x8xbf16>
    %38 = vector.shape_cast %37 : vector<1x4x8x8xbf16> to vector<4x8x8xbf16>
    %39 = vector.extract_strided_slice %34 {offsets = [2, 0, 0, 0], sizes = [1, 4, 8, 8], strides = [1, 1, 1, 1]} : vector<3x4x8x8xbf16> to vector<1x4x8x8xbf16>
    %40 = vector.shape_cast %39 : vector<1x4x8x8xbf16> to vector<4x8x8xbf16>
    "tpu.trace_start"() <{level = 10 : i32, message = "bqd,bkd->bqk"}> : () -> ()
    %cst_14 = arith.constant dense<0.000000e+00> : vector<4x8x8xf32>
    %41 = tpu.matmul %36, %38, %cst_14 {dimension_numbers = #tpu.dot_dimension_numbers<[2], [2], [1], [1], [0, 0, 0, 1, 1, 1], [0], [0]>} : vector<4x8x8xbf16>, vector<4x8x8xbf16>, vector<4x8x8xf32> -> vector<4x8x8xf32>
    "tpu.trace_stop"() : () -> ()
    %cst_15 = arith.constant dense<0xFF800000> : vector<4x8xf32>
    %42 = vector.multi_reduction <maximumf>, %41, %cst_15 [2] : vector<4x8x8xf32> to vector<4x8xf32>
    %43 = vector.shape_cast %42 : vector<4x8xf32> to vector<4x8x1xf32>
    %44 = vector.broadcast %43 : vector<4x8x1xf32> to vector<4x8x8xf32>
    %45 = arith.subf %41, %44 : vector<4x8x8xf32>
    %46 = math.exp %45 : vector<4x8x8xf32>
    %cst_16 = arith.constant dense<0.000000e+00> : vector<4x8xf32>
    %47 = vector.multi_reduction <add>, %46, %cst_16 [2] : vector<4x8x8xf32> to vector<4x8xf32>
    %48 = vector.shape_cast %47 : vector<4x8xf32> to vector<4x8x1xf32>
    %49 = tpu.reciprocal %48 {approx = true} : vector<4x8x1xf32> -> vector<4x8x1xf32>
    %50 = arith.truncf %46 : vector<4x8x8xf32> to vector<4x8x8xbf16>
    "tpu.trace_start"() <{level = 10 : i32, message = "bqk,bkd->bqd"}> : () -> ()
    %cst_17 = arith.constant dense<0.000000e+00> : vector<4x8x8xf32>
    %51 = tpu.matmul %50, %40, %cst_17 {dimension_numbers = #tpu.dot_dimension_numbers<[2], [1], [1], [2], [0, 0, 0, 1, 1, 2], [0], [0]>} : vector<4x8x8xbf16>, vector<4x8x8xbf16>, vector<4x8x8xf32> -> vector<4x8x8xf32>
    "tpu.trace_stop"() : () -> ()
    %52 = vector.broadcast %49 : vector<4x8x1xf32> to vector<4x8x8xf32>
    %53 = arith.mulf %51, %52 : vector<4x8x8xf32>
    %54 = arith.truncf %53 : vector<4x8x8xf32> to vector<4x8x8xbf16>
    %55 = vector.shape_cast %54 : vector<4x8x8xbf16> to vector<1x4x8x8xbf16>
    %56 = tpu.transpose %55, [0, 2, 1, 3] : vector<1x4x8x8xbf16> -> vector<1x8x4x8xbf16>
    %57 = vector.shape_cast %56 : vector<1x8x4x8xbf16> to vector<8x32xbf16>
    %c0_18 = arith.constant 0 : index
    %c0_19 = arith.constant 0 : index
    %58 = vector.load %arg6[%c0_18, %c0_19] : memref<32x32xbf16, #tpu.memory_space<vmem>>, vector<32x32xbf16>
    %cst_20 = arith.constant dense<0.000000e+00> : vector<8x32xf32>
    %59 = tpu.matmul %57, %58, %cst_20 {dimension_numbers = #tpu.dot_dimension_numbers<[1], [0], [0], [1], [0, 0, 1, 1], [], []>} : vector<8x32xbf16>, vector<32x32xbf16>, vector<8x32xf32> -> vector<8x32xf32>
    %c0_21 = arith.constant 0 : index
    %c0_22 = arith.constant 0 : index
    %60 = vector.load %arg7[%c0_21, %c0_22] : memref<1x32xf32, #tpu.memory_space<vmem>>, vector<1x32xf32>
    %61 = vector.broadcast %60 : vector<1x32xf32> to vector<8x32xf32>
    %62 = arith.addf %59, %61 : vector<8x32xf32>
    %c0_23 = arith.constant 0 : index
    %c0_24 = arith.constant 0 : index
    %63 = vector.load %arg1[%c0_23, %c0_24] : memref<8x32xf32, #tpu.memory_space<vmem>>, vector<8x32xf32>
    %64 = arith.addf %63, %62 : vector<8x32xf32>
    %c0_25 = arith.constant 0 : index
    %c0_26 = arith.constant 0 : index
    %65 = vector.load %arg8[%c0_25, %c0_26] : memref<1x32xf32, #tpu.memory_space<vmem>>, vector<1x32xf32>
    %c0_27 = arith.constant 0 : index
    %c0_28 = arith.constant 0 : index
    %66 = vector.load %arg9[%c0_27, %c0_28] : memref<1x32xf32, #tpu.memory_space<vmem>>, vector<1x32xf32>
    %cst_29 = arith.constant dense<0.000000e+00> : vector<8xf32>
    %67 = vector.multi_reduction <add>, %64, %cst_29 [1] : vector<8x32xf32> to vector<8xf32>
    %68 = vector.shape_cast %67 : vector<8xf32> to vector<8x1xf32>
    %cst_30 = arith.constant 3.200000e+01 : f32
    %69 = vector.broadcast %cst_30 : f32 to vector<8x1xf32>
    %70 = arith.divf %68, %69 : vector<8x1xf32>
    %71 = vector.broadcast %70 : vector<8x1xf32> to vector<8x32xf32>
    %72 = arith.subf %64, %71 : vector<8x32xf32>
    %73 = arith.mulf %72, %72 : vector<8x32xf32>
    %cst_31 = arith.constant dense<0.000000e+00> : vector<8xf32>
    %74 = vector.multi_reduction <add>, %73, %cst_31 [1] : vector<8x32xf32> to vector<8xf32>
    %75 = vector.shape_cast %74 : vector<8xf32> to vector<8x1xf32>
    %cst_32 = arith.constant 3.200000e+01 : f32
    %76 = vector.broadcast %cst_32 : f32 to vector<8x1xf32>
    %77 = arith.divf %75, %76 : vector<8x1xf32>
    %78 = vector.broadcast %70 : vector<8x1xf32> to vector<8x32xf32>
    %79 = arith.subf %64, %78 : vector<8x32xf32>
    %cst_33 = arith.constant 9.99999974E-6 : f32
    %80 = vector.broadcast %cst_33 : f32 to vector<8x1xf32>
    %81 = arith.addf %77, %80 : vector<8x1xf32>
    %82 = math.rsqrt %81 : vector<8x1xf32>
    %83 = vector.broadcast %82 : vector<8x1xf32> to vector<8x32xf32>
    %84 = arith.mulf %79, %83 : vector<8x32xf32>
    %85 = vector.broadcast %65 : vector<1x32xf32> to vector<8x32xf32>
    %86 = arith.mulf %84, %85 : vector<8x32xf32>
    %87 = vector.broadcast %66 : vector<1x32xf32> to vector<8x32xf32>
    %88 = arith.addf %86, %87 : vector<8x32xf32>
    %89 = arith.truncf %88 : vector<8x32xf32> to vector<8x32xbf16>
    %c0_34 = arith.constant 0 : index
    %c0_35 = arith.constant 0 : index
    %90 = vector.load %arg15[%c0_34, %c0_35] : memref<8x32xbf16, #tpu.memory_space<vmem>>, vector<8x32xbf16>
    tpu.vector_store %arg15[%c0_34, %c0_35], %89 {strides = array<i32>} : memref<8x32xbf16, #tpu.memory_space<vmem>>, vector<8x32xbf16>,
    %c0_36 = arith.constant 0 : index
    %c0_37 = arith.constant 0 : index
    %91 = vector.load %arg13[%c0_36, %c0_37] : memref<1x32xf32, #tpu.memory_space<vmem>>, vector<1x32xf32>
    %92 = vector.broadcast %91 : vector<1x32xf32> to vector<8x32xf32>
    %93 = arith.addf %64, %92 : vector<8x32xf32>
    %c0_38 = arith.constant 0 : index
    %c0_39 = arith.constant 0 : index
    %94 = vector.load %arg16[%c0_38, %c0_39] : memref<8x32xf32, #tpu.memory_space<vmem>>, vector<8x32xf32>
    tpu.vector_store %arg16[%c0_38, %c0_39], %93 {strides = array<i32>} : memref<8x32xf32, #tpu.memory_space<vmem>>, vector<8x32xf32>,
    %c0_40 = arith.constant 0 : index
    %c0_41 = arith.constant 0 : index
    %95 = vector.load %arg15[%c0_40, %c0_41] : memref<8x32xbf16, #tpu.memory_space<vmem>>, vector<8x32xbf16>
    %c0_42 = arith.constant 0 : index
    %c0_43 = arith.constant 0 : index
    %96 = vector.load %arg10[%c0_42, %c0_43] : memref<32x64xbf16, #tpu.memory_space<vmem>>, vector<32x64xbf16>
    %cst_44 = arith.constant dense<0.000000e+00> : vector<8x64xf32>
    %97 = tpu.matmul %95, %96, %cst_44 {dimension_numbers = #tpu.dot_dimension_numbers<[1], [0], [0], [1], [0, 0, 1, 1], [], []>} : vector<8x32xbf16>, vector<32x64xbf16>, vector<8x64xf32> -> vector<8x64xf32>
    %c0_45 = arith.constant 0 : index
    %c0_46 = arith.constant 0 : index
    %98 = vector.load %arg11[%c0_45, %c0_46] : memref<1x64xf32, #tpu.memory_space<vmem>>, vector<1x64xf32>
    %99 = vector.broadcast %98 : vector<1x64xf32> to vector<8x64xf32>
    %100 = arith.addf %97, %99 : vector<8x64xf32>
    %101 = arith.negf %100 : vector<8x64xf32>
    %102 = math.exp %101 : vector<8x64xf32>
    %cst_47 = arith.constant 1.000000e+00 : f32
    %103 = vector.broadcast %cst_47 : f32 to vector<8x64xf32>
    %104 = arith.addf %103, %102 : vector<8x64xf32>
    %105 = arith.divf %103, %104 : vector<8x64xf32>
    %106 = arith.mulf %100, %105 : vector<8x64xf32>
    %c0_48 = arith.constant 0 : index
    %c0_49 = arith.constant 0 : index
    %107 = vector.load %arg16[%c0_48, %c0_49] : memref<8x32xf32, #tpu.memory_space<vmem>>, vector<8x32xf32>
    %108 = arith.truncf %106 : vector<8x64xf32> to vector<8x64xbf16>
    %c0_50 = arith.constant 0 : index
    %c0_51 = arith.constant 0 : index
    %109 = vector.load %arg12[%c0_50, %c0_51] : memref<64x32xbf16, #tpu.memory_space<vmem>>, vector<64x32xbf16>
    %cst_52 = arith.constant dense<0.000000e+00> : vector<8x32xf32>
    %110 = tpu.matmul %108, %109, %cst_52 {dimension_numbers = #tpu.dot_dimension_numbers<[1], [0], [0], [1], [0, 0, 1, 1], [], []>} : vector<8x64xbf16>, vector<64x32xbf16>, vector<8x32xf32> -> vector<8x32xf32>
    %111 = arith.addf %107, %110 : vector<8x32xf32>
    %c0_53 = arith.constant 0 : index
    %c0_54 = arith.constant 0 : index
    %112 = vector.load %arg16[%c0_53, %c0_54] : memref<8x32xf32, #tpu.memory_space<vmem>>, vector<8x32xf32>
    tpu.vector_store %arg16[%c0_53, %c0_54], %111 {strides = array<i32>} : memref<8x32xf32, #tpu.memory_space<vmem>>, vector<8x32xf32>,
    %c0_55 = arith.constant 0 : index
    %c0_56 = arith.constant 0 : index
    %113 = vector.load %arg16[%c0_55, %c0_56] : memref<8x32xf32, #tpu.memory_space<vmem>>, vector<8x32xf32>
    %c0_57 = arith.constant 0 : index
    %c0_58 = arith.constant 0 : index
    %114 = vector.load %arg14[%c0_57, %c0_58] : memref<8x32xf32, #tpu.memory_space<vmem>>, vector<8x32xf32>
    tpu.vector_store %arg14[%c0_57, %c0_58], %113 {strides = array<i32>} : memref<8x32xf32, #tpu.memory_space<vmem>>, vector<8x32xf32>,
    return
  }
  func.func @transform_0(%arg0: i32) -> (i32, i32) {
    %c0_i32 = arith.constant 0 : i32
    %c0_i32_0 = arith.constant 0 : i32
    return %arg0, %c0_i32 : i32, i32
  }
  func.func @transform_1(%arg0: i32) -> (i32, i32) {
    %c0_i32 = arith.constant 0 : i32
    %c0_i32_0 = arith.constant 0 : i32
    %c0_i32_1 = arith.constant 0 : i32
    return %c0_i32, %c0_i32_0 : i32, i32
  }
  func.func @transform_2(%arg0: i32) -> (i32, i32) {
    %c0_i32 = arith.constant 0 : i32
    %c0_i32_0 = arith.constant 0 : i32
    %c0_i32_1 = arith.constant 0 : i32
    return %c0_i32, %c0_i32_0 : i32, i32
  }
  func.func @transform_3(%arg0: i32) -> (i32, i32) {
    %c0_i32 = arith.constant 0 : i32
    %c0_i32_0 = arith.constant 0 : i32
    %c0_i32_1 = arith.constant 0 : i32
    return %c0_i32, %c0_i32_0 : i32, i32
  }
  func.func @transform_4(%arg0: i32) -> (i32, i32) {
    %c0_i32 = arith.constant 0 : i32
    %c0_i32_0 = arith.constant 0 : i32
    %c0_i32_1 = arith.constant 0 : i32
    return %c0_i32, %c0_i32_0 : i32, i32
  }
  func.func @transform_5(%arg0: i32) -> (i32, i32) {
    %c0_i32 = arith.constant 0 : i32
    %c0_i32_0 = arith.constant 0 : i32
    %c0_i32_1 = arith.constant 0 : i32
    return %c0_i32, %c0_i32_0 : i32, i32
  }
  func.func @transform_6(%arg0: i32) -> (i32, i32) {
    %c0_i32 = arith.constant 0 : i32
    %c0_i32_0 = arith.constant 0 : i32
    %c0_i32_1 = arith.constant 0 : i32
    return %c0_i32, %c0_i32_0 : i32, i32
  }
  func.func @transform_7(%arg0: i32) -> (i32, i32) {
    %c0_i32 = arith.constant 0 : i32
    %c0_i32_0 = arith.constant 0 : i32
    %c0_i32_1 = arith.constant 0 : i32
    return %c0_i32, %c0_i32_0 : i32, i32
  }
  func.func @transform_8(%arg0: i32) -> (i32, i32) {
    %c0_i32 = arith.constant 0 : i32
    %c0_i32_0 = arith.constant 0 : i32
    %c0_i32_1 = arith.constant 0 : i32
    return %c0_i32, %c0_i32_0 : i32, i32
  }
  func.func @transform_9(%arg0: i32) -> (i32, i32) {
    %c0_i32 = arith.constant 0 : i32
    %c0_i32_0 = arith.constant 0 : i32
    %c0_i32_1 = arith.constant 0 : i32
    return %c0_i32, %c0_i32_0 : i32, i32
  }
  func.func @transform_10(%arg0: i32) -> (i32, i32) {
    %c0_i32 = arith.constant 0 : i32
    %c0_i32_0 = arith.constant 0 : i32
    %c0_i32_1 = arith.constant 0 : i32
    return %c0_i32, %c0_i32_0 : i32, i32
  }
  func.func @transform_11(%arg0: i32) -> (i32, i32) {
    %c0_i32 = arith.constant 0 : i32
    %c0_i32_0 = arith.constant 0 : i32
    %c0_i32_1 = arith.constant 0 : i32
    return %c0_i32, %c0_i32_0 : i32, i32
  }
  func.func @transform_12(%arg0: i32) -> (i32, i32) {
    %c0_i32 = arith.constant 0 : i32
    %c0_i32_0 = arith.constant 0 : i32
    %c0_i32_1 = arith.constant 0 : i32
    return %c0_i32, %c0_i32_0 : i32, i32
  }
  func.func @transform_13(%arg0: i32) -> (i32, i32) {
    %c0_i32 = arith.constant 0 : i32
    %c0_i32_0 = arith.constant 0 : i32
    return %arg0, %c0_i32 : i32, i32
  }
}

module attributes {stable_mosaic.version = 11 : i64} {
  func.func @transformer_encoder_kernel(%arg0: i32, %arg1: memref<8x32xf32, #tpu.memory_space<vmem>>, %arg2: memref<1x32xf32, #tpu.memory_space<vmem>>, %arg3: memref<1x32xf32, #tpu.memory_space<vmem>>, %arg4: memref<32x96xbf16, #tpu.memory_space<vmem>>, %arg5: memref<1x96xf32, #tpu.memory_space<vmem>>, %arg6: memref<32x32xbf16, #tpu.memory_space<vmem>>, %arg7: memref<1x32xf32, #tpu.memory_space<vmem>>, %arg8: memref<1x32xf32, #tpu.memory_space<vmem>>, %arg9: memref<1x32xf32, #tpu.memory_space<vmem>>, %arg10: memref<32x64xbf16, #tpu.memory_space<vmem>>, %arg11: memref<1x64xf32, #tpu.memory_space<vmem>>, %arg12: memref<64x32xbf16, #tpu.memory_space<vmem>>, %arg13: memref<1x32xf32, #tpu.memory_space<vmem>>, %arg14: memref<8x32xf32, #tpu.memory_space<vmem>>, %arg15: memref<4x8x8xbf16, #tpu.memory_space<vmem>>, %arg16: memref<4x8x8xbf16, #tpu.memory_space<vmem>>, %arg17: memref<4x8x8xbf16, #tpu.memory_space<vmem>>, %arg18: memref<8x32xbf16, #tpu.memory_space<vmem>>, %arg19: memref<8x32xbf16, #tpu.memory_space<vmem>>, %arg20: memref<8x32xf32, #tpu.memory_space<vmem>>) attributes {dimension_semantics = [#tpu.dimension_semantics<parallel>], iteration_bounds = array<i64: 2>, scalar_prefetch = 0 : i64, scratch_operands = 6 : i64, tpu.core_type = #tpu.core_type<tc>, window_params = [{transform_indices = @transform_0, window_bounds = array<i64: 8, 32>}, {pipeline_mode = #tpu.pipeline_mode<synchronous>, transform_indices = @transform_1, window_bounds = array<i64: 1, 32>}, {pipeline_mode = #tpu.pipeline_mode<synchronous>, transform_indices = @transform_2, window_bounds = array<i64: 1, 32>}, {pipeline_mode = #tpu.pipeline_mode<synchronous>, transform_indices = @transform_3, window_bounds = array<i64: 32, 96>}, {pipeline_mode = #tpu.pipeline_mode<synchronous>, transform_indices = @transform_4, window_bounds = array<i64: 1, 96>}, {pipeline_mode = #tpu.pipeline_mode<synchronous>, transform_indices = @transform_5, window_bounds = array<i64: 32, 32>}, {pipeline_mode = #tpu.pipeline_mode<synchronous>, transform_indices = @transform_6, window_bounds = array<i64: 1, 32>}, {pipeline_mode = #tpu.pipeline_mode<synchronous>, transform_indices = @transform_7, window_bounds = array<i64: 1, 32>}, {pipeline_mode = #tpu.pipeline_mode<synchronous>, transform_indices = @transform_8, window_bounds = array<i64: 1, 32>}, {pipeline_mode = #tpu.pipeline_mode<synchronous>, transform_indices = @transform_9, window_bounds = array<i64: 32, 64>}, {pipeline_mode = #tpu.pipeline_mode<synchronous>, transform_indices = @transform_10, window_bounds = array<i64: 1, 64>}, {pipeline_mode = #tpu.pipeline_mode<synchronous>, transform_indices = @transform_11, window_bounds = array<i64: 64, 32>}, {pipeline_mode = #tpu.pipeline_mode<synchronous>, transform_indices = @transform_12, window_bounds = array<i64: 1, 32>}, {transform_indices = @transform_13, window_bounds = array<i64: 8, 32>}]} {
    %c0 = arith.constant 0 : index
    %c0_0 = arith.constant 0 : index
    %0 = vector.load %arg1[%c0, %c0_0] : memref<8x32xf32, #tpu.memory_space<vmem>>, vector<8x32xf32>
    %c0_1 = arith.constant 0 : index
    %c0_2 = arith.constant 0 : index
    %1 = vector.load %arg2[%c0_1, %c0_2] : memref<1x32xf32, #tpu.memory_space<vmem>>, vector<1x32xf32>
    %c0_3 = arith.constant 0 : index
    %c0_4 = arith.constant 0 : index
    %2 = vector.load %arg3[%c0_3, %c0_4] : memref<1x32xf32, #tpu.memory_space<vmem>>, vector<1x32xf32>
    %cst = arith.constant dense<0.000000e+00> : vector<8xf32>
    %3 = vector.multi_reduction <add>, %0, %cst [1] : vector<8x32xf32> to vector<8xf32>
    %4 = vector.shape_cast %3 : vector<8xf32> to vector<8x1xf32>
    %cst_5 = arith.constant 3.200000e+01 : f32
    %5 = vector.broadcast %cst_5 : f32 to vector<8x1xf32>
    %6 = arith.divf %4, %5 : vector<8x1xf32>
    %7 = vector.broadcast %6 : vector<8x1xf32> to vector<8x32xf32>
    %8 = arith.subf %0, %7 : vector<8x32xf32>
    %9 = arith.mulf %8, %8 : vector<8x32xf32>
    %cst_6 = arith.constant dense<0.000000e+00> : vector<8xf32>
    %10 = vector.multi_reduction <add>, %9, %cst_6 [1] : vector<8x32xf32> to vector<8xf32>
    %11 = vector.shape_cast %10 : vector<8xf32> to vector<8x1xf32>
    %cst_7 = arith.constant 3.200000e+01 : f32
    %12 = vector.broadcast %cst_7 : f32 to vector<8x1xf32>
    %13 = arith.divf %11, %12 : vector<8x1xf32>
    %14 = vector.broadcast %6 : vector<8x1xf32> to vector<8x32xf32>
    %15 = arith.subf %0, %14 : vector<8x32xf32>
    %cst_8 = arith.constant 9.99999974E-6 : f32
    %16 = vector.broadcast %cst_8 : f32 to vector<8x1xf32>
    %17 = arith.addf %13, %16 : vector<8x1xf32>
    %18 = math.rsqrt %17 : vector<8x1xf32>
    %19 = vector.broadcast %18 : vector<8x1xf32> to vector<8x32xf32>
    %20 = arith.mulf %15, %19 : vector<8x32xf32>
    %21 = vector.broadcast %1 : vector<1x32xf32> to vector<8x32xf32>
    %22 = arith.mulf %20, %21 : vector<8x32xf32>
    %23 = vector.broadcast %2 : vector<1x32xf32> to vector<8x32xf32>
    %24 = arith.addf %22, %23 : vector<8x32xf32>
    %25 = arith.truncf %24 : vector<8x32xf32> to vector<8x32xbf16>
    %c0_9 = arith.constant 0 : index
    %c0_10 = arith.constant 0 : index
    %26 = vector.load %arg4[%c0_9, %c0_10] : memref<32x96xbf16, #tpu.memory_space<vmem>>, vector<32x96xbf16>
    %cst_11 = arith.constant dense<0.000000e+00> : vector<8x96xf32>
    %27 = tpu.matmul %25, %26, %cst_11 {dimension_numbers = #tpu.dot_dimension_numbers<[1], [0], [0], [1], [0, 0, 1, 1], [], []>} : vector<8x32xbf16>, vector<32x96xbf16>, vector<8x96xf32> -> vector<8x96xf32>
    %c0_12 = arith.constant 0 : index
    %c0_13 = arith.constant 0 : index
    %28 = vector.load %arg5[%c0_12, %c0_13] : memref<1x96xf32, #tpu.memory_space<vmem>>, vector<1x96xf32>
    %29 = vector.broadcast %28 : vector<1x96xf32> to vector<8x96xf32>
    %30 = arith.addf %27, %29 : vector<8x96xf32>
    %31 = vector.extract_strided_slice %30 {offsets = [0, 0], sizes = [8, 8], strides = [1, 1]} : vector<8x96xf32> to vector<8x8xf32>
    %32 = arith.truncf %31 : vector<8x8xf32> to vector<8x8xbf16>
    %c0_14 = arith.constant 0 : index
    %c0_15 = arith.constant 0 : index
    %c0_16 = arith.constant 0 : index
    %33 = vector.load %arg15[%c0_14, %c0_15, %c0_16] : memref<4x8x8xbf16, #tpu.memory_space<vmem>>, vector<1x8x8xbf16>
    %34 = vector.shape_cast %33 : vector<1x8x8xbf16> to vector<8x8xbf16>
    %35 = vector.shape_cast %32 : vector<8x8xbf16> to vector<1x8x8xbf16>
    tpu.vector_store %arg15[%c0_14, %c0_15, %c0_16], %35 {strides = array<i32>} : memref<4x8x8xbf16, #tpu.memory_space<vmem>>, vector<1x8x8xbf16>,
    %36 = vector.extract_strided_slice %30 {offsets = [0, 32], sizes = [8, 8], strides = [1, 1]} : vector<8x96xf32> to vector<8x8xf32>
    %37 = arith.truncf %36 : vector<8x8xf32> to vector<8x8xbf16>
    %c0_17 = arith.constant 0 : index
    %c0_18 = arith.constant 0 : index
    %c0_19 = arith.constant 0 : index
    %38 = vector.load %arg16[%c0_17, %c0_18, %c0_19] : memref<4x8x8xbf16, #tpu.memory_space<vmem>>, vector<1x8x8xbf16>
    %39 = vector.shape_cast %38 : vector<1x8x8xbf16> to vector<8x8xbf16>
    %40 = vector.shape_cast %37 : vector<8x8xbf16> to vector<1x8x8xbf16>
    tpu.vector_store %arg16[%c0_17, %c0_18, %c0_19], %40 {strides = array<i32>} : memref<4x8x8xbf16, #tpu.memory_space<vmem>>, vector<1x8x8xbf16>,
    %41 = vector.extract_strided_slice %30 {offsets = [0, 64], sizes = [8, 8], strides = [1, 1]} : vector<8x96xf32> to vector<8x8xf32>
    %42 = arith.truncf %41 : vector<8x8xf32> to vector<8x8xbf16>
    %c0_20 = arith.constant 0 : index
    %c0_21 = arith.constant 0 : index
    %c0_22 = arith.constant 0 : index
    %43 = vector.load %arg17[%c0_20, %c0_21, %c0_22] : memref<4x8x8xbf16, #tpu.memory_space<vmem>>, vector<1x8x8xbf16>
    %44 = vector.shape_cast %43 : vector<1x8x8xbf16> to vector<8x8xbf16>
    %45 = vector.shape_cast %42 : vector<8x8xbf16> to vector<1x8x8xbf16>
    tpu.vector_store %arg17[%c0_20, %c0_21, %c0_22], %45 {strides = array<i32>} : memref<4x8x8xbf16, #tpu.memory_space<vmem>>, vector<1x8x8xbf16>,
    %46 = vector.extract_strided_slice %30 {offsets = [0, 8], sizes = [8, 8], strides = [1, 1]} : vector<8x96xf32> to vector<8x8xf32>
    %47 = arith.truncf %46 : vector<8x8xf32> to vector<8x8xbf16>
    %c1 = arith.constant 1 : index
    %c0_23 = arith.constant 0 : index
    %c0_24 = arith.constant 0 : index
    %48 = vector.load %arg15[%c1, %c0_23, %c0_24] : memref<4x8x8xbf16, #tpu.memory_space<vmem>>, vector<1x8x8xbf16>
    %49 = vector.shape_cast %48 : vector<1x8x8xbf16> to vector<8x8xbf16>
    %50 = vector.shape_cast %47 : vector<8x8xbf16> to vector<1x8x8xbf16>
    tpu.vector_store %arg15[%c1, %c0_23, %c0_24], %50 {strides = array<i32>} : memref<4x8x8xbf16, #tpu.memory_space<vmem>>, vector<1x8x8xbf16>,
    %51 = vector.extract_strided_slice %30 {offsets = [0, 40], sizes = [8, 8], strides = [1, 1]} : vector<8x96xf32> to vector<8x8xf32>
    %52 = arith.truncf %51 : vector<8x8xf32> to vector<8x8xbf16>
    %c1_25 = arith.constant 1 : index
    %c0_26 = arith.constant 0 : index
    %c0_27 = arith.constant 0 : index
    %53 = vector.load %arg16[%c1_25, %c0_26, %c0_27] : memref<4x8x8xbf16, #tpu.memory_space<vmem>>, vector<1x8x8xbf16>
    %54 = vector.shape_cast %53 : vector<1x8x8xbf16> to vector<8x8xbf16>
    %55 = vector.shape_cast %52 : vector<8x8xbf16> to vector<1x8x8xbf16>
    tpu.vector_store %arg16[%c1_25, %c0_26, %c0_27], %55 {strides = array<i32>} : memref<4x8x8xbf16, #tpu.memory_space<vmem>>, vector<1x8x8xbf16>,
    %56 = vector.extract_strided_slice %30 {offsets = [0, 72], sizes = [8, 8], strides = [1, 1]} : vector<8x96xf32> to vector<8x8xf32>
    %57 = arith.truncf %56 : vector<8x8xf32> to vector<8x8xbf16>
    %c1_28 = arith.constant 1 : index
    %c0_29 = arith.constant 0 : index
    %c0_30 = arith.constant 0 : index
    %58 = vector.load %arg17[%c1_28, %c0_29, %c0_30] : memref<4x8x8xbf16, #tpu.memory_space<vmem>>, vector<1x8x8xbf16>
    %59 = vector.shape_cast %58 : vector<1x8x8xbf16> to vector<8x8xbf16>
    %60 = vector.shape_cast %57 : vector<8x8xbf16> to vector<1x8x8xbf16>
    tpu.vector_store %arg17[%c1_28, %c0_29, %c0_30], %60 {strides = array<i32>} : memref<4x8x8xbf16, #tpu.memory_space<vmem>>, vector<1x8x8xbf16>,
    %61 = vector.extract_strided_slice %30 {offsets = [0, 16], sizes = [8, 8], strides = [1, 1]} : vector<8x96xf32> to vector<8x8xf32>
    %62 = arith.truncf %61 : vector<8x8xf32> to vector<8x8xbf16>
    %c2 = arith.constant 2 : index
    %c0_31 = arith.constant 0 : index
    %c0_32 = arith.constant 0 : index
    %63 = vector.load %arg15[%c2, %c0_31, %c0_32] : memref<4x8x8xbf16, #tpu.memory_space<vmem>>, vector<1x8x8xbf16>
    %64 = vector.shape_cast %63 : vector<1x8x8xbf16> to vector<8x8xbf16>
    %65 = vector.shape_cast %62 : vector<8x8xbf16> to vector<1x8x8xbf16>
    tpu.vector_store %arg15[%c2, %c0_31, %c0_32], %65 {strides = array<i32>} : memref<4x8x8xbf16, #tpu.memory_space<vmem>>, vector<1x8x8xbf16>,
    %66 = vector.extract_strided_slice %30 {offsets = [0, 48], sizes = [8, 8], strides = [1, 1]} : vector<8x96xf32> to vector<8x8xf32>
    %67 = arith.truncf %66 : vector<8x8xf32> to vector<8x8xbf16>
    %c2_33 = arith.constant 2 : index
    %c0_34 = arith.constant 0 : index
    %c0_35 = arith.constant 0 : index
    %68 = vector.load %arg16[%c2_33, %c0_34, %c0_35] : memref<4x8x8xbf16, #tpu.memory_space<vmem>>, vector<1x8x8xbf16>
    %69 = vector.shape_cast %68 : vector<1x8x8xbf16> to vector<8x8xbf16>
    %70 = vector.shape_cast %67 : vector<8x8xbf16> to vector<1x8x8xbf16>
    tpu.vector_store %arg16[%c2_33, %c0_34, %c0_35], %70 {strides = array<i32>} : memref<4x8x8xbf16, #tpu.memory_space<vmem>>, vector<1x8x8xbf16>,
    %71 = vector.extract_strided_slice %30 {offsets = [0, 80], sizes = [8, 8], strides = [1, 1]} : vector<8x96xf32> to vector<8x8xf32>
    %72 = arith.truncf %71 : vector<8x8xf32> to vector<8x8xbf16>
    %c2_36 = arith.constant 2 : index
    %c0_37 = arith.constant 0 : index
    %c0_38 = arith.constant 0 : index
    %73 = vector.load %arg17[%c2_36, %c0_37, %c0_38] : memref<4x8x8xbf16, #tpu.memory_space<vmem>>, vector<1x8x8xbf16>
    %74 = vector.shape_cast %73 : vector<1x8x8xbf16> to vector<8x8xbf16>
    %75 = vector.shape_cast %72 : vector<8x8xbf16> to vector<1x8x8xbf16>
    tpu.vector_store %arg17[%c2_36, %c0_37, %c0_38], %75 {strides = array<i32>} : memref<4x8x8xbf16, #tpu.memory_space<vmem>>, vector<1x8x8xbf16>,
    %76 = vector.extract_strided_slice %30 {offsets = [0, 24], sizes = [8, 8], strides = [1, 1]} : vector<8x96xf32> to vector<8x8xf32>
    %77 = arith.truncf %76 : vector<8x8xf32> to vector<8x8xbf16>
    %c3 = arith.constant 3 : index
    %c0_39 = arith.constant 0 : index
    %c0_40 = arith.constant 0 : index
    %78 = vector.load %arg15[%c3, %c0_39, %c0_40] : memref<4x8x8xbf16, #tpu.memory_space<vmem>>, vector<1x8x8xbf16>
    %79 = vector.shape_cast %78 : vector<1x8x8xbf16> to vector<8x8xbf16>
    %80 = vector.shape_cast %77 : vector<8x8xbf16> to vector<1x8x8xbf16>
    tpu.vector_store %arg15[%c3, %c0_39, %c0_40], %80 {strides = array<i32>} : memref<4x8x8xbf16, #tpu.memory_space<vmem>>, vector<1x8x8xbf16>,
    %81 = vector.extract_strided_slice %30 {offsets = [0, 56], sizes = [8, 8], strides = [1, 1]} : vector<8x96xf32> to vector<8x8xf32>
    %82 = arith.truncf %81 : vector<8x8xf32> to vector<8x8xbf16>
    %c3_41 = arith.constant 3 : index
    %c0_42 = arith.constant 0 : index
    %c0_43 = arith.constant 0 : index
    %83 = vector.load %arg16[%c3_41, %c0_42, %c0_43] : memref<4x8x8xbf16, #tpu.memory_space<vmem>>, vector<1x8x8xbf16>
    %84 = vector.shape_cast %83 : vector<1x8x8xbf16> to vector<8x8xbf16>
    %85 = vector.shape_cast %82 : vector<8x8xbf16> to vector<1x8x8xbf16>
    tpu.vector_store %arg16[%c3_41, %c0_42, %c0_43], %85 {strides = array<i32>} : memref<4x8x8xbf16, #tpu.memory_space<vmem>>, vector<1x8x8xbf16>,
    %86 = vector.extract_strided_slice %30 {offsets = [0, 88], sizes = [8, 8], strides = [1, 1]} : vector<8x96xf32> to vector<8x8xf32>
    %87 = arith.truncf %86 : vector<8x8xf32> to vector<8x8xbf16>
    %c3_44 = arith.constant 3 : index
    %c0_45 = arith.constant 0 : index
    %c0_46 = arith.constant 0 : index
    %88 = vector.load %arg17[%c3_44, %c0_45, %c0_46] : memref<4x8x8xbf16, #tpu.memory_space<vmem>>, vector<1x8x8xbf16>
    %89 = vector.shape_cast %88 : vector<1x8x8xbf16> to vector<8x8xbf16>
    %90 = vector.shape_cast %87 : vector<8x8xbf16> to vector<1x8x8xbf16>
    tpu.vector_store %arg17[%c3_44, %c0_45, %c0_46], %90 {strides = array<i32>} : memref<4x8x8xbf16, #tpu.memory_space<vmem>>, vector<1x8x8xbf16>,
    %c0_47 = arith.constant 0 : index
    %c0_48 = arith.constant 0 : index
    %c0_49 = arith.constant 0 : index
    %91 = vector.load %arg15[%c0_47, %c0_48, %c0_49] : memref<4x8x8xbf16, #tpu.memory_space<vmem>>, vector<4x8x8xbf16>
    %c0_50 = arith.constant 0 : index
    %c0_51 = arith.constant 0 : index
    %c0_52 = arith.constant 0 : index
    %92 = vector.load %arg16[%c0_50, %c0_51, %c0_52] : memref<4x8x8xbf16, #tpu.memory_space<vmem>>, vector<4x8x8xbf16>
    %c0_53 = arith.constant 0 : index
    %c0_54 = arith.constant 0 : index
    %c0_55 = arith.constant 0 : index
    %93 = vector.load %arg17[%c0_53, %c0_54, %c0_55] : memref<4x8x8xbf16, #tpu.memory_space<vmem>>, vector<4x8x8xbf16>
    "tpu.trace_start"() <{level = 10 : i32, message = "bqd,bkd->bqk"}> : () -> ()
    %cst_56 = arith.constant dense<0.000000e+00> : vector<4x8x8xf32>
    %94 = tpu.matmul %91, %92, %cst_56 {dimension_numbers = #tpu.dot_dimension_numbers<[2], [2], [1], [1], [0, 0, 0, 1, 1, 1], [0], [0]>} : vector<4x8x8xbf16>, vector<4x8x8xbf16>, vector<4x8x8xf32> -> vector<4x8x8xf32>
    "tpu.trace_stop"() : () -> ()
    %cst_57 = arith.constant dense<0xFF800000> : vector<4x8xf32>
    %95 = vector.multi_reduction <maximumf>, %94, %cst_57 [2] : vector<4x8x8xf32> to vector<4x8xf32>
    %96 = vector.shape_cast %95 : vector<4x8xf32> to vector<4x8x1xf32>
    %97 = vector.broadcast %96 : vector<4x8x1xf32> to vector<4x8x8xf32>
    %98 = arith.subf %94, %97 : vector<4x8x8xf32>
    %99 = math.exp %98 : vector<4x8x8xf32>
    %cst_58 = arith.constant dense<0.000000e+00> : vector<4x8xf32>
    %100 = vector.multi_reduction <add>, %99, %cst_58 [2] : vector<4x8x8xf32> to vector<4x8xf32>
    %101 = vector.shape_cast %100 : vector<4x8xf32> to vector<4x8x1xf32>
    %102 = tpu.reciprocal %101 {approx = true} : vector<4x8x1xf32> -> vector<4x8x1xf32>
    %103 = arith.truncf %99 : vector<4x8x8xf32> to vector<4x8x8xbf16>
    "tpu.trace_start"() <{level = 10 : i32, message = "bqk,bkd->bqd"}> : () -> ()
    %cst_59 = arith.constant dense<0.000000e+00> : vector<4x8x8xf32>
    %104 = tpu.matmul %103, %93, %cst_59 {dimension_numbers = #tpu.dot_dimension_numbers<[2], [1], [1], [2], [0, 0, 0, 1, 1, 2], [0], [0]>} : vector<4x8x8xbf16>, vector<4x8x8xbf16>, vector<4x8x8xf32> -> vector<4x8x8xf32>
    "tpu.trace_stop"() : () -> ()
    %105 = vector.broadcast %102 : vector<4x8x1xf32> to vector<4x8x8xf32>
    %106 = arith.mulf %104, %105 : vector<4x8x8xf32>
    %107 = arith.truncf %106 : vector<4x8x8xf32> to vector<4x8x8xbf16>
    %108 = vector.extract_strided_slice %107 {offsets = [0, 0, 0], sizes = [1, 8, 8], strides = [1, 1, 1]} : vector<4x8x8xbf16> to vector<1x8x8xbf16>
    %109 = vector.shape_cast %108 : vector<1x8x8xbf16> to vector<8x8xbf16>
    %c0_60 = arith.constant 0 : index
    %c0_61 = arith.constant 0 : index
    %110 = vector.load %arg18[%c0_60, %c0_61] : memref<8x32xbf16, #tpu.memory_space<vmem>>, vector<8x8xbf16>
    tpu.vector_store %arg18[%c0_60, %c0_61], %109 {strides = array<i32>} : memref<8x32xbf16, #tpu.memory_space<vmem>>, vector<8x8xbf16>,
    %111 = vector.extract_strided_slice %107 {offsets = [1, 0, 0], sizes = [1, 8, 8], strides = [1, 1, 1]} : vector<4x8x8xbf16> to vector<1x8x8xbf16>
    %112 = vector.shape_cast %111 : vector<1x8x8xbf16> to vector<8x8xbf16>
    %c0_62 = arith.constant 0 : index
    %c8 = arith.constant 8 : index
    %113 = vector.load %arg18[%c0_62, %c8] : memref<8x32xbf16, #tpu.memory_space<vmem>>, vector<8x8xbf16>
    tpu.vector_store %arg18[%c0_62, %c8], %112 {strides = array<i32>} : memref<8x32xbf16, #tpu.memory_space<vmem>>, vector<8x8xbf16>,
    %114 = vector.extract_strided_slice %107 {offsets = [2, 0, 0], sizes = [1, 8, 8], strides = [1, 1, 1]} : vector<4x8x8xbf16> to vector<1x8x8xbf16>
    %115 = vector.shape_cast %114 : vector<1x8x8xbf16> to vector<8x8xbf16>
    %c0_63 = arith.constant 0 : index
    %c16 = arith.constant 16 : index
    %116 = vector.load %arg18[%c0_63, %c16] : memref<8x32xbf16, #tpu.memory_space<vmem>>, vector<8x8xbf16>
    tpu.vector_store %arg18[%c0_63, %c16], %115 {strides = array<i32>} : memref<8x32xbf16, #tpu.memory_space<vmem>>, vector<8x8xbf16>,
    %117 = vector.extract_strided_slice %107 {offsets = [3, 0, 0], sizes = [1, 8, 8], strides = [1, 1, 1]} : vector<4x8x8xbf16> to vector<1x8x8xbf16>
    %118 = vector.shape_cast %117 : vector<1x8x8xbf16> to vector<8x8xbf16>
    %c0_64 = arith.constant 0 : index
    %c24 = arith.constant 24 : index
    %119 = vector.load %arg18[%c0_64, %c24] : memref<8x32xbf16, #tpu.memory_space<vmem>>, vector<8x8xbf16>
    tpu.vector_store %arg18[%c0_64, %c24], %118 {strides = array<i32>} : memref<8x32xbf16, #tpu.memory_space<vmem>>, vector<8x8xbf16>,
    %c0_65 = arith.constant 0 : index
    %c0_66 = arith.constant 0 : index
    %120 = vector.load %arg18[%c0_65, %c0_66] : memref<8x32xbf16, #tpu.memory_space<vmem>>, vector<8x32xbf16>
    %c0_67 = arith.constant 0 : index
    %c0_68 = arith.constant 0 : index
    %121 = vector.load %arg6[%c0_67, %c0_68] : memref<32x32xbf16, #tpu.memory_space<vmem>>, vector<32x32xbf16>
    %cst_69 = arith.constant dense<0.000000e+00> : vector<8x32xf32>
    %122 = tpu.matmul %120, %121, %cst_69 {dimension_numbers = #tpu.dot_dimension_numbers<[1], [0], [0], [1], [0, 0, 1, 1], [], []>} : vector<8x32xbf16>, vector<32x32xbf16>, vector<8x32xf32> -> vector<8x32xf32>
    %c0_70 = arith.constant 0 : index
    %c0_71 = arith.constant 0 : index
    %123 = vector.load %arg7[%c0_70, %c0_71] : memref<1x32xf32, #tpu.memory_space<vmem>>, vector<1x32xf32>
    %124 = vector.broadcast %123 : vector<1x32xf32> to vector<8x32xf32>
    %125 = arith.addf %122, %124 : vector<8x32xf32>
    %c0_72 = arith.constant 0 : index
    %c0_73 = arith.constant 0 : index
    %126 = vector.load %arg1[%c0_72, %c0_73] : memref<8x32xf32, #tpu.memory_space<vmem>>, vector<8x32xf32>
    %127 = arith.addf %126, %125 : vector<8x32xf32>
    %c0_74 = arith.constant 0 : index
    %c0_75 = arith.constant 0 : index
    %128 = vector.load %arg8[%c0_74, %c0_75] : memref<1x32xf32, #tpu.memory_space<vmem>>, vector<1x32xf32>
    %c0_76 = arith.constant 0 : index
    %c0_77 = arith.constant 0 : index
    %129 = vector.load %arg9[%c0_76, %c0_77] : memref<1x32xf32, #tpu.memory_space<vmem>>, vector<1x32xf32>
    %cst_78 = arith.constant dense<0.000000e+00> : vector<8xf32>
    %130 = vector.multi_reduction <add>, %127, %cst_78 [1] : vector<8x32xf32> to vector<8xf32>
    %131 = vector.shape_cast %130 : vector<8xf32> to vector<8x1xf32>
    %cst_79 = arith.constant 3.200000e+01 : f32
    %132 = vector.broadcast %cst_79 : f32 to vector<8x1xf32>
    %133 = arith.divf %131, %132 : vector<8x1xf32>
    %134 = vector.broadcast %133 : vector<8x1xf32> to vector<8x32xf32>
    %135 = arith.subf %127, %134 : vector<8x32xf32>
    %136 = arith.mulf %135, %135 : vector<8x32xf32>
    %cst_80 = arith.constant dense<0.000000e+00> : vector<8xf32>
    %137 = vector.multi_reduction <add>, %136, %cst_80 [1] : vector<8x32xf32> to vector<8xf32>
    %138 = vector.shape_cast %137 : vector<8xf32> to vector<8x1xf32>
    %cst_81 = arith.constant 3.200000e+01 : f32
    %139 = vector.broadcast %cst_81 : f32 to vector<8x1xf32>
    %140 = arith.divf %138, %139 : vector<8x1xf32>
    %141 = vector.broadcast %133 : vector<8x1xf32> to vector<8x32xf32>
    %142 = arith.subf %127, %141 : vector<8x32xf32>
    %cst_82 = arith.constant 9.99999974E-6 : f32
    %143 = vector.broadcast %cst_82 : f32 to vector<8x1xf32>
    %144 = arith.addf %140, %143 : vector<8x1xf32>
    %145 = math.rsqrt %144 : vector<8x1xf32>
    %146 = vector.broadcast %145 : vector<8x1xf32> to vector<8x32xf32>
    %147 = arith.mulf %142, %146 : vector<8x32xf32>
    %148 = vector.broadcast %128 : vector<1x32xf32> to vector<8x32xf32>
    %149 = arith.mulf %147, %148 : vector<8x32xf32>
    %150 = vector.broadcast %129 : vector<1x32xf32> to vector<8x32xf32>
    %151 = arith.addf %149, %150 : vector<8x32xf32>
    %152 = arith.truncf %151 : vector<8x32xf32> to vector<8x32xbf16>
    %c0_83 = arith.constant 0 : index
    %c0_84 = arith.constant 0 : index
    %153 = vector.load %arg19[%c0_83, %c0_84] : memref<8x32xbf16, #tpu.memory_space<vmem>>, vector<8x32xbf16>
    tpu.vector_store %arg19[%c0_83, %c0_84], %152 {strides = array<i32>} : memref<8x32xbf16, #tpu.memory_space<vmem>>, vector<8x32xbf16>,
    %c0_85 = arith.constant 0 : index
    %c0_86 = arith.constant 0 : index
    %154 = vector.load %arg13[%c0_85, %c0_86] : memref<1x32xf32, #tpu.memory_space<vmem>>, vector<1x32xf32>
    %155 = vector.broadcast %154 : vector<1x32xf32> to vector<8x32xf32>
    %156 = arith.addf %127, %155 : vector<8x32xf32>
    %c0_87 = arith.constant 0 : index
    %c0_88 = arith.constant 0 : index
    %157 = vector.load %arg20[%c0_87, %c0_88] : memref<8x32xf32, #tpu.memory_space<vmem>>, vector<8x32xf32>
    tpu.vector_store %arg20[%c0_87, %c0_88], %156 {strides = array<i32>} : memref<8x32xf32, #tpu.memory_space<vmem>>, vector<8x32xf32>,
    %c0_89 = arith.constant 0 : index
    %c0_90 = arith.constant 0 : index
    %158 = vector.load %arg19[%c0_89, %c0_90] : memref<8x32xbf16, #tpu.memory_space<vmem>>, vector<8x32xbf16>
    %c0_91 = arith.constant 0 : index
    %c0_92 = arith.constant 0 : index
    %159 = vector.load %arg10[%c0_91, %c0_92] : memref<32x64xbf16, #tpu.memory_space<vmem>>, vector<32x64xbf16>
    %cst_93 = arith.constant dense<0.000000e+00> : vector<8x64xf32>
    %160 = tpu.matmul %158, %159, %cst_93 {dimension_numbers = #tpu.dot_dimension_numbers<[1], [0], [0], [1], [0, 0, 1, 1], [], []>} : vector<8x32xbf16>, vector<32x64xbf16>, vector<8x64xf32> -> vector<8x64xf32>
    %c0_94 = arith.constant 0 : index
    %c0_95 = arith.constant 0 : index
    %161 = vector.load %arg11[%c0_94, %c0_95] : memref<1x64xf32, #tpu.memory_space<vmem>>, vector<1x64xf32>
    %162 = vector.broadcast %161 : vector<1x64xf32> to vector<8x64xf32>
    %163 = arith.addf %160, %162 : vector<8x64xf32>
    %164 = arith.negf %163 : vector<8x64xf32>
    %165 = math.exp %164 : vector<8x64xf32>
    %cst_96 = arith.constant 1.000000e+00 : f32
    %166 = vector.broadcast %cst_96 : f32 to vector<8x64xf32>
    %167 = arith.addf %166, %165 : vector<8x64xf32>
    %168 = arith.divf %166, %167 : vector<8x64xf32>
    %169 = arith.mulf %163, %168 : vector<8x64xf32>
    %c0_97 = arith.constant 0 : index
    %c0_98 = arith.constant 0 : index
    %170 = vector.load %arg20[%c0_97, %c0_98] : memref<8x32xf32, #tpu.memory_space<vmem>>, vector<8x32xf32>
    %171 = arith.truncf %169 : vector<8x64xf32> to vector<8x64xbf16>
    %c0_99 = arith.constant 0 : index
    %c0_100 = arith.constant 0 : index
    %172 = vector.load %arg12[%c0_99, %c0_100] : memref<64x32xbf16, #tpu.memory_space<vmem>>, vector<64x32xbf16>
    %cst_101 = arith.constant dense<0.000000e+00> : vector<8x32xf32>
    %173 = tpu.matmul %171, %172, %cst_101 {dimension_numbers = #tpu.dot_dimension_numbers<[1], [0], [0], [1], [0, 0, 1, 1], [], []>} : vector<8x64xbf16>, vector<64x32xbf16>, vector<8x32xf32> -> vector<8x32xf32>
    %174 = arith.addf %170, %173 : vector<8x32xf32>
    %c0_102 = arith.constant 0 : index
    %c0_103 = arith.constant 0 : index
    %175 = vector.load %arg20[%c0_102, %c0_103] : memref<8x32xf32, #tpu.memory_space<vmem>>, vector<8x32xf32>
    tpu.vector_store %arg20[%c0_102, %c0_103], %174 {strides = array<i32>} : memref<8x32xf32, #tpu.memory_space<vmem>>, vector<8x32xf32>,
    %c0_104 = arith.constant 0 : index
    %c0_105 = arith.constant 0 : index
    %176 = vector.load %arg20[%c0_104, %c0_105] : memref<8x32xf32, #tpu.memory_space<vmem>>, vector<8x32xf32>
    %c0_106 = arith.constant 0 : index
    %c0_107 = arith.constant 0 : index
    %177 = vector.load %arg14[%c0_106, %c0_107] : memref<8x32xf32, #tpu.memory_space<vmem>>, vector<8x32xf32>
    tpu.vector_store %arg14[%c0_106, %c0_107], %176 {strides = array<i32>} : memref<8x32xf32, #tpu.memory_space<vmem>>, vector<8x32xf32>,
    return
  }
  func.func @transform_0(%arg0: i32) -> (i32, i32) {
    %c0_i32 = arith.constant 0 : i32
    %c0_i32_0 = arith.constant 0 : i32
    return %arg0, %c0_i32 : i32, i32
  }
  func.func @transform_1(%arg0: i32) -> (i32, i32) {
    %c0_i32 = arith.constant 0 : i32
    %c0_i32_0 = arith.constant 0 : i32
    %c0_i32_1 = arith.constant 0 : i32
    return %c0_i32, %c0_i32_0 : i32, i32
  }
  func.func @transform_2(%arg0: i32) -> (i32, i32) {
    %c0_i32 = arith.constant 0 : i32
    %c0_i32_0 = arith.constant 0 : i32
    %c0_i32_1 = arith.constant 0 : i32
    return %c0_i32, %c0_i32_0 : i32, i32
  }
  func.func @transform_3(%arg0: i32) -> (i32, i32) {
    %c0_i32 = arith.constant 0 : i32
    %c0_i32_0 = arith.constant 0 : i32
    %c0_i32_1 = arith.constant 0 : i32
    return %c0_i32, %c0_i32_0 : i32, i32
  }
  func.func @transform_4(%arg0: i32) -> (i32, i32) {
    %c0_i32 = arith.constant 0 : i32
    %c0_i32_0 = arith.constant 0 : i32
    %c0_i32_1 = arith.constant 0 : i32
    return %c0_i32, %c0_i32_0 : i32, i32
  }
  func.func @transform_5(%arg0: i32) -> (i32, i32) {
    %c0_i32 = arith.constant 0 : i32
    %c0_i32_0 = arith.constant 0 : i32
    %c0_i32_1 = arith.constant 0 : i32
    return %c0_i32, %c0_i32_0 : i32, i32
  }
  func.func @transform_6(%arg0: i32) -> (i32, i32) {
    %c0_i32 = arith.constant 0 : i32
    %c0_i32_0 = arith.constant 0 : i32
    %c0_i32_1 = arith.constant 0 : i32
    return %c0_i32, %c0_i32_0 : i32, i32
  }
  func.func @transform_7(%arg0: i32) -> (i32, i32) {
    %c0_i32 = arith.constant 0 : i32
    %c0_i32_0 = arith.constant 0 : i32
    %c0_i32_1 = arith.constant 0 : i32
    return %c0_i32, %c0_i32_0 : i32, i32
  }
  func.func @transform_8(%arg0: i32) -> (i32, i32) {
    %c0_i32 = arith.constant 0 : i32
    %c0_i32_0 = arith.constant 0 : i32
    %c0_i32_1 = arith.constant 0 : i32
    return %c0_i32, %c0_i32_0 : i32, i32
  }
  func.func @transform_9(%arg0: i32) -> (i32, i32) {
    %c0_i32 = arith.constant 0 : i32
    %c0_i32_0 = arith.constant 0 : i32
    %c0_i32_1 = arith.constant 0 : i32
    return %c0_i32, %c0_i32_0 : i32, i32
  }
  func.func @transform_10(%arg0: i32) -> (i32, i32) {
    %c0_i32 = arith.constant 0 : i32
    %c0_i32_0 = arith.constant 0 : i32
    %c0_i32_1 = arith.constant 0 : i32
    return %c0_i32, %c0_i32_0 : i32, i32
  }
  func.func @transform_11(%arg0: i32) -> (i32, i32) {
    %c0_i32 = arith.constant 0 : i32
    %c0_i32_0 = arith.constant 0 : i32
    %c0_i32_1 = arith.constant 0 : i32
    return %c0_i32, %c0_i32_0 : i32, i32
  }
  func.func @transform_12(%arg0: i32) -> (i32, i32) {
    %c0_i32 = arith.constant 0 : i32
    %c0_i32_0 = arith.constant 0 : i32
    %c0_i32_1 = arith.constant 0 : i32
    return %c0_i32, %c0_i32_0 : i32, i32
  }
  func.func @transform_13(%arg0: i32) -> (i32, i32) {
    %c0_i32 = arith.constant 0 : i32
    %c0_i32_0 = arith.constant 0 : i32
    return %arg0, %c0_i32 : i32, i32
  }
}

</mosaic_0001>

<bundles_post_ra>
// kernel: tpu_custom_call.1
= control target key start
LH: loop header
LB: loop body
LE: loop exit
PB: predicated region body
PF: predicated region fallthrough
CT: control target
= control target key end

     0   :  { %s2436_s0 = inlined_call_operand.vmem [shape: f32[16,32], index: 0, kind: input, shape index: {}]   ;;  %s2437_s1 = inlined_call_operand.vmem [shape: f32[1,32], index: 1, kind: input, shape index: {}]   ;;  %s2438_s2 = inlined_call_operand.vmem [shape: f32[1,32], index: 2, kind: input, shape index: {}]   ;;  %s2439_s3 = inlined_call_operand.vmem [shape: bf16[32,96], index: 3, kind: input, shape index: {}]   ;;  %s2440_s4 = inlined_call_operand.hbm [shape: f32[1,96], index: 4, kind: input, shape index: {}]   ;;  %s2441_s5 = inlined_call_operand.vmem [shape: bf16[32,32], index: 5, kind: input, shape index: {}]   ;;  %s2442_s6 = inlined_call_operand.hbm [shape: f32[1,32], index: 6, kind: input, shape index: {}]   ;;  %s2443_s7 = inlined_call_operand.hbm [shape: f32[1,32], index: 7, kind: input, shape index: {}]   ;;  %s2444_s8 = inlined_call_operand.hbm [shape: f32[1,32], index: 8, kind: input, shape index: {}]   ;;  %s2445_s9 = inlined_call_operand.vmem [shape: bf16[32,64], index: 9, kind: input, shape index: {}]   ;;  %s2446_s10 = inlined_call_operand.vmem [shape: f32[1,64], index: 10, kind: input, shape index: {}]   ;;  %s2447_s11 = inlined_call_operand.vmem [shape: bf16[64,32], index: 11, kind: input, shape index: {}]   ;;  %s2448_s12 = inlined_call_operand.vmem [shape: f32[1,32], index: 12, kind: input, shape index: {}]   ;;  %s2449_s13 = inlined_call_operand.hbm [shape: f32[16,32], index: 13, kind: output, shape index: {}]  }
   0x1   :  { %2460 = sst [smem:[#allocation27_spill]] %s2449_s13 }
   0x2   :  { %18 = vsyncpa [#allocation9], 0 }
   0x3   :  { %19 = vsyncpa [#allocation12], 0 }
   0x4   :  { %20 = vsyncpa [#allocation15], 0 }
   0x5   :  { %21 = vsyncpa [#allocation10], 0 }
   0x6   :  { %23 = vsyncpa [#allocation10 + $0x1], 0  ;;  %s2065_s25 = smov 0   ;;  %s2067_s26 = smov 0  }
   0x7   :  { %s2069_s27 = smov 0   ;;  %s2071_s28 = smov 0  }
   0x8 LB: > { %2461 = sst [smem:[#allocation21_spill]] %s1960_s25  ;;  %s2086_s29 = sadd.s32 4294967295, %s1972_s28   ;;  %s1972_s28 = sphi %s2071_s28, %s2485_s28   ;;  %s1968_s27 = sphi %s2069_s27, %s2487_s27   ;;  %s1964_s26 = sphi %s2067_s26, %s2489_s26   ;;  %s1960_s25 = sphi %s2065_s25, %s2488_s25  }
   0x9   : > { %2462 = sst [smem:[#allocation22_spill]] %s1968_s27  ;;  %s1485_s30 = sadd.s32 4294967294, %s1972_s28  }
   0xa   : > { %2463 = sst [smem:[#allocation23_spill]] %s1972_s28  ;;  %s2090_s14 = sadd.s32 1, %s1972_s28  }
   0xb   : > { %2464 = sst [smem:[#allocation24_spill]] %s2090_s14  ;;  %s314_s15 = sadd.s32 1, %s1968_s27 }
   0xc   : > { %s311_s16 = ssub.s32 %s1972_s28, %s2090_s14  ;;  %p324_p0 = scmp.ne.s32.totalorder %s1968_s27, %s1964_s26 }
   0xd   : > { %p312_p1 = scmp.eq.s32.totalorder %s311_s16, 0  ;;  %p325_p2 = scmp.eq.s32.totalorder %s2086_s29, 1 }
   0xe   : > { %p330_p3 = scmp.ne.s32.totalorder %s1964_s26, %s1960_s25  ;;  %p331_p4 = scmp.eq.s32.totalorder %s1485_s30, 1 }
   0xf   : > { %s2101_s17 = scalar_select %p312_p1, %s1968_s27, %s314_s15  }
  0x10   : > { %p2103_p5 = por %p325_p2, %p324_p0  ;;  %p2107_p6 = por %p331_p4, %p330_p3 }
  0x11   : > { %2465 = sst [smem:[#allocation25_spill]] %s2101_s17  ;;  %p1486_p7 = scmp.ge.s32.totalorder %s1972_s28, 1 }
  0x12   : > { %s2466_s18 = scalar_select %p2103_p5, 1, 0 }
  0x13   : > { %s2467_s19 = scalar_select %p2107_p6, 1, 0 }
  0x14   : > { %p338_p8 = scmp.lt.s32.totalorder %s1972_s28, 3  ;;  %p2455_p9 = scmp.eq.s32.totalorder %s2086_s29, 0 }
  0x15   : > { %2468 = sst [smem:[#allocation26_spill]] %s2467_s19  ;;  %s1974_s21 = smov [#allocation11]  }
  0x16   : > { %p2114_p10 = pnand %p1486_p7, %p338_p8  ;;  %s374_s22 = sshll.u32 %s1974_s21, 4  ;;  %s375_s22 = int_to_ptr.vmem [resolvable:$true] %s374_s22 }
  0x17   : > { %s1975_s23 = smov [#allocation8]   ;;  %s1976_s15 = smov [#allocation13]  }
  0x18   : > { %s2469_s20 = scalar_select %p2114_p10, 1, 0 }
  0x19   : > { %p1674_p11 = pneg %p2114_p10  ;;  %s360_s24 = sshll.u32 %s1975_s23, 4  ;;  %s2126_s24 = int_to_ptr.vmem [resolvable:$true] %s360_s24 }
  0x1a   : > { %s385_s16 = sshll.u32 %s1976_s15, 4  ;;  %s1786_s21 = scalar_lea.hbm %s2442_s6, 16  ;;  %s2128_s16 = int_to_ptr.vmem [resolvable:$true] %s385_s16 }
  0x1b   : > { %p2122_p12 = pnand %p2455_p9, %p1674_p11  ;;  %p1787_p13 = scmp.ne.s32.totalorder %s2442_s6, %s1786_s21 }
  0x1c   : > { %p1793_p3 = scmp.lt.u32.totalorder %s1786_s21, %s2442_s6 }
  0x1d   : > { %p2138_p0 = pneg %p2122_p12 }
  0x1f   : > { %p1789_p1 = pnand %p2138_p0, %p1787_p13 }
  0x21   : > { %p1790_p2 = pneg %p1789_p1 }
  0x23   : > { %p1795_p4 = pnand %p1793_p3, %p1790_p2 }
  0x25   : > { %1798 = shalt.err (!%p1795_p4)
}
  0x26   : > { %s1799_s27 = scalar_lea.vmem %s375_s22, 16  ;;  %s1806_s14 = scalar_lea.vmem %s375_s22, 32 }
  0x27   : > { %p1800_p7 = scmp.ne.s32.totalorder %s375_s22, %s1799_s27  ;;  %p1807_p9 = scmp.lt.s32.totalorder %s375_s22, %s375_s22 }
  0x28   : > { %p1808_p6 = scmp.lt.s32.totalorder %s1806_s14, %s1799_s27 }
  0x29   : > { %p1802_p8 = pnand %p1800_p7, %p2138_p0 }
  0x2a   : > { %p1809_p5 = por %p1808_p6, %p1807_p9 }
  0x2b   : > { %p1803_p11 = pneg %p1802_p8 }
  0x2d   : > { %p1810_p10 = pnand %p1809_p5, %p1803_p11 }
  0x2f   : > { %1813 = shalt.err (!%p1810_p10)
}
  0x30   : > { %1680 = dma.hbm_to_vmem [thread:$0]  (!%p2122_p12), %s2442_s6, 16, %s375_s22, [#allocation12]  }
  0x31   : > { %s1814_s15 = scalar_lea.hbm %s2440_s4, 16 }
  0x32   : > { %p1815_p13 = scmp.ne.s32.totalorder %s2440_s4, %s1814_s15  ;;  %p1821_p5 = scmp.lt.u32.totalorder %s1814_s15, %s2440_s4 }
  0x34   : > { %p1817_p1 = pnand %p1815_p13, %p2138_p0 }
  0x36   : > { %p1818_p6 = pneg %p1817_p1 }
  0x38   : > { %p1823_p9 = pnand %p1821_p5, %p1818_p6 }
  0x3a   : > { %1826 = shalt.err (!%p1823_p9)
}
  0x3b   : > { %s1827_s22 = scalar_lea.vmem %s2126_s24, 16  ;;  %s1834_s13 = scalar_lea.vmem %s2126_s24, 32 }
  0x3c   : > { %p1828_p10 = scmp.ne.s32.totalorder %s2126_s24, %s1827_s22  ;;  %p1835_p4 = scmp.lt.s32.totalorder %s2126_s24, %s2126_s24 }
  0x3d   : > { %p1836_p7 = scmp.lt.s32.totalorder %s1834_s13, %s1827_s22 }
  0x3e   : > { %p1830_p2 = pnand %p1828_p10, %p2138_p0 }
  0x3f   : > { %p1837_p8 = por %p1836_p7, %p1835_p4 }
  0x40   : > { %p1831_p3 = pneg %p1830_p2 }
  0x42   : > { %p1838_p11 = pnand %p1837_p8, %p1831_p3 }
  0x44   : > { %1841 = shalt.err (!%p1838_p11)
}
  0x45   : > { %1677 = dma.hbm_to_vmem [thread:$0]  (!%p2122_p12), %s2440_s4, 16, %s2126_s24, [#allocation9]  }
  0x46   : > { %s1842_s21 = scalar_lea.hbm %s2443_s7, 16 }
  0x47   : > { %p1843_p13 = scmp.ne.s32.totalorder %s2443_s7, %s1842_s21  ;;  %p1849_p5 = scmp.lt.u32.totalorder %s1842_s21, %s2443_s7 }
  0x49   : > { %p1845_p1 = pnand %p1843_p13, %p2138_p0 }
  0x4b   : > { %p1846_p6 = pneg %p1845_p1 }
  0x4d   : > { %p1851_p9 = pnand %p1849_p5, %p1846_p6 }
  0x4f   : > { %1854 = shalt.err (!%p1851_p9)
}
  0x50   : > { %s1855_s24 = scalar_lea.vmem %s2128_s16, 16  ;;  %s1862_s13 = scalar_lea.vmem %s2128_s16, 32 }
  0x51   : > { %p1856_p10 = scmp.ne.s32.totalorder %s2128_s16, %s1855_s24  ;;  %p1863_p4 = scmp.lt.s32.totalorder %s2128_s16, %s2128_s16 }
  0x52   : > { %p1864_p7 = scmp.lt.s32.totalorder %s1862_s13, %s1855_s24 }
  0x53   : > { %p1858_p2 = pnand %p1856_p10, %p2138_p0 }
  0x54   : > { %p1865_p8 = por %p1864_p7, %p1863_p4 }
  0x55   : > { %p1859_p3 = pneg %p1858_p2 }
  0x57   : > { %p1866_p11 = pnand %p1865_p8, %p1859_p3 }
  0x59   : > { %1869 = shalt.err (!%p1866_p11)
}
  0x5a   : > { %1683 = dma.hbm_to_vmem [thread:$0]  (!%p2122_p12), %s2443_s7, 16, %s2128_s16, [#allocation12]  }
  0x5b   : > { %s1977_s19 = smov [#allocation14]   ;;  %s1870_s27 = scalar_lea.hbm %s2444_s8, 16 }
  0x5c   : > { %s396_s25 = sshll.u32 %s1977_s19, 4  ;;  %p1871_p13 = scmp.ne.s32.totalorder %s2444_s8, %s1870_s27  ;;  %s397_s25 = int_to_ptr.vmem [resolvable:$true] %s396_s25 }
  0x5d   : > { %p1877_p5 = scmp.lt.u32.totalorder %s1870_s27, %s2444_s8 }
  0x5e   : > { %p1873_p1 = pnand %p1871_p13, %p2138_p0 }
  0x60   : > { %p1874_p6 = pneg %p1873_p1 }
  0x62   : > { %p1879_p9 = pnand %p1877_p5, %p1874_p6 }
  0x64   : > { %1882 = shalt.err (!%p1879_p9)
}
  0x65   : > { %s1883_s16 = scalar_lea.vmem %s397_s25, 16  ;;  %s1890_s28 = scalar_lea.vmem %s397_s25, 32 }
  0x66   : > { %p1884_p10 = scmp.ne.s32.totalorder %s397_s25, %s1883_s16  ;;  %p1891_p4 = scmp.lt.s32.totalorder %s397_s25, %s397_s25 }
  0x67   : > { %p1892_p7 = scmp.lt.s32.totalorder %s1890_s28, %s1883_s16 }
  0x68   : > { %p1886_p2 = pnand %p1884_p10, %p2138_p0 }
  0x69   : > { %p1893_p8 = por %p1892_p7, %p1891_p4 }
  0x6a   : > { %p1887_p3 = pneg %p1886_p2 }
  0x6c   : > { %p1894_p11 = pnand %p1893_p8, %p1887_p3 }
  0x6e   : > { %1897 = shalt.err (!%p1894_p11)
}
  0x6f   : > { %1686 = dma.hbm_to_vmem [thread:$0]  (!%p2122_p12), %s2444_s8, 16, %s397_s25, [#allocation15]  }
  0x70   : > { %p2472_p13 = scmp.ne.s32.totalorder %s2469_s20, 0 }
  0x71   : > { %p2473_p1 = scmp.eq.s32.totalorder (!%p2472_p13), %s2086_s29, 0 }
  0x72   : > { %428 = sbr.rel (%p2472_p13) target bundleno = 2547 (0x9f3), region = 72 }
  0x79   : > { %1943 = dma.done.wait (%p2473_p1), [#allocation9], 16   ;;  %p2474_p0 = pmov %p2473_p1 }
  0x7b   : > { %1945 = vsyncadd (%p2474_p0), [#allocation9], 4294967280  ;;  %p2475_p6 = pmov %p2474_p0 }
  0x7c   : > { %p2476_p5 = pmov %p2474_p0 }
  0x7d   : > { %1947 = dma.done.wait (%p2475_p6), [#allocation12], 32  }
  0x7e   : > { %1949 = vsyncadd (%p2476_p5), [#allocation12], 4294967264  ;;  %p2477_p9 = pmov %p2474_p0 }
  0x7f   : > { %p2478_p12 = pmov %p2474_p0 }
  0x80   : > { %1951 = dma.done.wait (%p2477_p9), [#allocation15], 16  }
  0x81   : > { %1953 = vsyncadd (%p2478_p12), [#allocation15], 4294967280  ;;  %p483_p10 = scmp.lt.s32.totalorder %s2086_s29, 1  ;;  %vm491_vm0 = vcmask 261120   ;;  %v1752_v7 = vld [vmem:[%s2439_s3] sm:$0xff]   ;;  %v1978_v8 = vmov 0.0  }
  0x82   : > { %1572 = vmatprep.subr.bf16.mxu0 %v1978_v8  ;;  %vm1979_vm1 = vmmov 0   ;;  %v1753_v9 = vld [vmem:[%s2439_s3 + $0x8] sm:$0xff]   ;;  %1580 = vmatprep.subr.bf16.mxu1 %v1978_v8  ;;  %v1499_v14 = vld [vmem:[%s2437_s1] ss:$0 sm:$0xff]  ;;  %vm588_vm2 = vcmask 60416   ;;  %s1980_s17 = smov 80  }
  0x83   : > { %s484_s20 = scalar_select %p483_p10, %s2086_s29, 1  ;;  %1576 = vmatprep.mubr.msk.bf16.mxu0 %vm1979_vm1, %v1978_v8  ;;  %1573 = vmatpush3.bf16.msra.mxu0 %v1752_v7  ;;  %v1500_v16 = vld [vmem:[%s2438_s2] ss:$0 sm:$0xff]  ;;  %vm658_vm3 = vcmask 64512   ;;  %vm890_vm4 = vcmask 1043456   ;;  %vm1087_vm5 = vcmask 126016  }
  0x84   : > { %1574 = vmatprep.subr.bf16.mxu0 %v1978_v8  ;;  %1582 = vmatprep.mubr.msk.bf16.mxu1 %vm1979_vm1, %v1978_v8  ;;  %v1501_v20 = vld [vmem:[#allocation8] ss:$0 sm:$0xff]  ;;  %s1981_s19 = smov 96   ;;  %s1984_s23 = smov 72   ;;  %vm1095_vm6 = vcmask 191616   ;;  %vm1103_vm7 = vcmask 257216  }
  0x85   : > { %s1498_s30 = sshll.u32 %s484_s20, 3  ;;  %s1982_s20 = smov 88   ;;  %vm1204_vm8 = vcmask 257024   ;;  %vm1323_vm9 = vcmask 523264  }
  0x86   : > { %s486_s21 = scalar_lea.vmem %s2436_s0, %s1498_s30  ;;  %s1983_s30 = smov 120  }
  0x87   : > { %v2239_v0 = vld [vmem:[%s486_s21] sm:$0xff]  ;;  %1575 = vmatpush3.bf16.msra.mxu0 %v1753_v9  ;;  %s1985_s25 = smov 112   ;;  %s1986_s21 = smov 104  }
  0x88   : > { %v492_v1 = vsel %vm491_vm0, %v2239_v0, 0.0  ;;  %1586 = vmatprep.subr.bf16.mxu0 %v1978_v8  ;;  %s1987_s15 = smov 64   ;;  %s1988_s27 = smov 48  }
  0x89   : > { %493 = vadd.xlane.f32.xlu0 %v492_v1  ;;  %s1989_s14 = smov 40   ;;  %s1990_s22 = smov 56  }
  0x8a   : > { %s2479_s24 = sld [smem:[#allocation27_spill]]  ;;  %p2480_p3 = scmp.ne.s32.totalorder %s2466_s18, 0 }
 0x116   : > { %v494_v2 = vpop.xlane.xlu0 %493 }
 0x117   : > { %v496_v3 = vmul.f32 0.03125, %v494_v2 }
 0x119   : > { %v497_v4 = vsub.f32 %v2239_v0, %v496_v3 }
 0x11b   : > { %v498_v5 = vmul.f32 %v497_v4, %v497_v4 }
 0x11d   : > { %v499_v6 = vsel %vm491_vm0, %v498_v5, 0.0 }
 0x11e   : > { %500 = vadd.xlane.f32.xlu0 %v499_v6 }
 0x1ab   : > { %v501_v10 = vpop.xlane.xlu0 %500 }
 0x1ac   : > { %v502_v11 = vmul.f32 0.03125, %v501_v10 }
 0x1ae   : > { %v503_v12 = vadd.f32 1e-05, %v502_v11 }
 0x1b0   : > { %1762 = vrsqrt.f32 %v503_v12 }
 0x1ba   : > { %v1763_v13 = vpop.eup %1762 }
 0x1bb   : > { %v505_v15 = vmul.f32 %v1763_v13, %v497_v4 }
 0x1bd   : > { %v512_v17 = vmul.f32 %v1499_v14, %v505_v15 }
 0x1bf   : > { %v519_v18 = vadd.f32 %v1500_v16, %v512_v17 }
 0x1c1   : > { %v520_v19 = vpack.c.bf16 %v519_v18, %v519_v18 }
 0x1c3   : > { %1577 = vmatmul.mubr.msk.bf16.vlgmr.msra.gmra.mrb[0].mxu0 %vm491_vm0, %v520_v19 }
 0x1c4   : > { %1588 = vmatprep.mubr.msk.bf16.mxu0 %vm1979_vm1, %v1978_v8 }
 0x296   : > { %v581_v21 = vpop.f32.mrb[0].mxu0 }
 0x297   : > { %v582_v22 = vadd.f32 %v1501_v20, %v581_v21  ;;  %v1578_v23 = vpop.f32.mrb[1].mxu0 }
 0x298   : > { %v584_v24 = vpop.f32.mrb[2].mxu0 }
 0x299   : > { %v2268_v25 = vpack.c.bf16 %v582_v22, %v582_v22  ;;  %v1579_v26 = vpop.f32.mrb[3].mxu0 }
 0x29b   : > { %621 = vrot.lane.b32.xlu0 %v2268_v25, %s1980_s17  ;;  %593 = vrot.lane.b32.xlu1 %v2268_v25, %s1981_s19  ;;  %589 = vst.msk [vmem:[#allocation2] sm:$0xf] %vm588_vm2, %v2268_v25  ;;  %s1991_s17 = smov 16   ;;  %s1992_s19 = smov 8  }
 0x29f   : > { %606 = vrot.lane.b32.xlu1 %v2268_v25, %s1982_s20  ;;  %s1993_s20 = smov 24  }
 0x2a2   : > { %v646_v38 = vld [vmem:[#allocation2] sm:$0xf] }
 0x2a3   : > { %601 = vrot.lane.b32.xlu1 %v2268_v25, %s1983_s30 }
 0x2a7   : > { %636 = vrot.lane.b32.xlu1 %v2268_v25, %s1984_s23  ;;  %s480_s23 = sand.u32 1, %s1964_s26  }
 0x2a8   : > { %s1372_s16 = scalar_lea.sflag [#allocation10], %s480_s23 }
 0x2ab   : > { %616 = vrot.lane.b32.xlu1 %v2268_v25, %s1985_s25  ;;  %s1497_s25 = sshll.u32 %s480_s23, 3 }
 0x2af   : > { %631 = vrot.lane.b32.xlu1 %v2268_v25, %s1986_s21  ;;  %s1535_s21 = sshll.u32 %s2086_s29, 7  ;;  %s1994_s29 = smov [#allocation16]  }
 0x2b0   : > { %s2393_s13 = scalar_lea.hbm %s2479_s24, %s1535_s21 }
 0x2b3   : > { %597 = vrot.lane.b32.xlu1 %v2268_v25, %s1987_s15  ;;  %s482_s15 = scalar_lea.vmem [#allocation16], %s1497_s25 }
 0x30d   : > { %v622_v27 = vpop.permute.xlu0 %621  ;;  %v594_v28 = vpop.permute.xlu1 %593 }
 0x30e   : > { %625 = vst.msk [vmem:[#allocation3 + $0x8] sm:$0xf] %vm588_vm2, %v622_v27  ;;  %596 = vst.msk [vmem:[#allocation3] sm:$0xf] %vm588_vm2, %v594_v28 }
 0x311   : > { %v607_v29 = vpop.permute.xlu1 %606 }
 0x312   : > { %610 = vst.msk [vmem:[#allocation3 + $0x4] sm:$0xf] %vm588_vm2, %v607_v29 }
 0x315   : > { %v602_v30 = vpop.permute.xlu1 %601  ;;  %v650_v31 = vld [vmem:[#allocation3] sm:$0xf]  ;;  %v652_v36 = vld [vmem:[#allocation3 + $0x8] sm:$0xf] }
 0x316   : > { %605 = vst.msk [vmem:[#allocation2 + $0x4] sm:$0xf] %vm588_vm2, %v602_v30  ;;  %v663_v32 = vsel %vm658_vm3, %v650_v31, 0  ;;  %v755_v39 = vsel %vm658_vm3, %v652_v36, 0 }
 0x317   : > { %1581 = vmatpush3.bf16.xpose.msra.mxu1 %v663_v32 }
 0x318   : > { %1592 = vmatprep.subr.bf16.mxu1 %v1978_v8 }
 0x319   : > { %v637_v33 = vpop.permute.xlu1 %636  ;;  %v651_v34 = vld [vmem:[#allocation3 + $0x4] sm:$0xf] }
 0x31a   : > { %640 = vst.msk [vmem:[#allocation3 + $0xc] sm:$0xf] %vm588_vm2, %v637_v33  ;;  %v709_v35 = vsel %vm658_vm3, %v651_v34, 0 }
 0x31b   : > { %1587 = vmatpush3.bf16.xpose.msra.mxu0 %v709_v35 }
 0x31c   : > { %1598 = vmatprep.subr.bf16.mxu0 %v1978_v8 }
 0x31d   : > { %v617_v37 = vpop.permute.xlu1 %616  ;;  %v647_v41 = vld [vmem:[#allocation2 + $0x4] sm:$0xf] }
 0x31e   : > { %620 = vst.msk [vmem:[#allocation2 + $0x8] sm:$0xf] %vm588_vm2, %v617_v37  ;;  %1583 = vmatmul.mubr.msk.bf16.vlgmr.msra.gmra.mrb[0].mxu1 %vm658_vm3, %v646_v38 }
 0x31f   : > { %1593 = vmatpush3.bf16.xpose.msra.mxu1 %v755_v39  ;;  %1594 = vmatprep.mubr.msk.bf16.mxu1 %vm1979_vm1, %v1978_v8 }
 0x320   : > { %1604 = vmatprep.subr.bf16.mxu1 %v1978_v8 }
 0x321   : > { %v632_v40 = vpop.permute.xlu1 %631  ;;  %v653_v42 = vld [vmem:[#allocation3 + $0xc] sm:$0xf] }
 0x322   : > { %635 = vst.msk [vmem:[#allocation2 + $0xc] sm:$0xf] %vm588_vm2, %v632_v40  ;;  %1589 = vmatmul.mubr.msk.bf16.vlgmr.msra.gmra.mrb[4].mxu0 %vm658_vm3, %v647_v41  ;;  %v801_v43 = vsel %vm658_vm3, %v653_v42, 0 }
 0x323   : > { %1599 = vmatpush3.bf16.xpose.msra.mxu0 %v801_v43  ;;  %1600 = vmatprep.mubr.msk.bf16.mxu0 %vm1979_vm1, %v1978_v8 }
 0x324   : > { %1610 = vmatprep.subr.bf16.mxu0 %v1978_v8 }
 0x325   : > { %v598_v44 = vpop.permute.xlu1 %597  ;;  %v648_v45 = vld [vmem:[#allocation2 + $0x8] sm:$0xf] }
 0x326   : > { %600 = vst.msk [vmem:[#allocation4] sm:$0xf] %vm588_vm2, %v598_v44  ;;  %1595 = vmatmul.mubr.msk.bf16.vlgmr.msra.gmra.mrb[4].mxu1 %vm658_vm3, %v648_v45 }
 0x327   : > { %1606 = vmatprep.mubr.msk.bf16.mxu1 %vm1979_vm1, %v1978_v8 }
 0x329   : > { %v649_v46 = vld [vmem:[#allocation2 + $0xc] sm:$0xf] }
 0x32a   : > { %1601 = vmatmul.mubr.msk.bf16.vlgmr.msra.gmra.mrb[8].mxu0 %vm658_vm3, %v649_v46 }
 0x32b   : > { %1612 = vmatprep.mubr.msk.bf16.mxu0 %vm1979_vm1, %v1978_v8 }
 0x32d   : > { %v654_v47 = vld [vmem:[#allocation4] sm:$0xf] }
 0x32e   : > { %v892_v48 = vsel %vm890_vm4, %v654_v47, 0 }
 0x32f   : > { %1605 = vmatpush3.bf16.msra.mxu1 %v892_v48 }
 0x330   : > { %1616 = vmatprep.subr.bf16.mxu1 %v1978_v8 }
 0x3f1   : > { %v699_v49 = vpop.f32.mrb[0].mxu1 }
 0x3f2   : > { %v1584_v50 = vpop.f32.mrb[1].mxu1  ;;  %v843_v51 = vsel %vm658_vm3, %v699_v49, -inf }
 0x3f3   : > { %844 = vmax.xlane.f32.xlu1 %v843_v51  ;;  %v702_v52 = vpop.f32.mrb[2].mxu1 }
 0x3f4   : > { %v1585_v53 = vpop.f32.mrb[3].mxu1 }
 0x3f5   : > { %v745_v54 = vpop.f32.mrb[4].mxu0 }
 0x3f6   : > { %v1590_v55 = vpop.f32.mrb[5].mxu0  ;;  %v846_v56 = vsel %vm658_vm3, %v745_v54, -inf }
 0x3f7   : > { %847 = vmax.xlane.f32.xlu0 %v846_v56  ;;  %v748_v57 = vpop.f32.mrb[6].mxu0  ;;  %v1754_v56 = vld [vmem:[%s2441_s5] sm:$0xff]  }
 0x3f8   : > { %v1591_v58 = vpop.f32.mrb[7].mxu0 }
 0x3f9   : > { %v791_v59 = vpop.f32.mrb[4].mxu1 }
 0x3fa   : > { %v1596_v60 = vpop.f32.mrb[5].mxu1  ;;  %v849_v61 = vsel %vm658_vm3, %v791_v59, -inf }
 0x3fb   : > { %850 = vmax.xlane.f32.xlu1 %v849_v61  ;;  %v794_v62 = vpop.f32.mrb[6].mxu1 }
 0x3fc   : > { %v1597_v63 = vpop.f32.mrb[7].mxu1 }
 0x3fd   : > { %v837_v1 = vpop.f32.mrb[8].mxu0  ;;  %v1755_v63 = vld [vmem:[%s2441_s5 + $0x8] sm:$0xff]  }
 0x3fe   : > { %v1602_v2 = vpop.f32.mrb[9].mxu0  ;;  %v852_v3 = vsel %vm658_vm3, %v837_v1, -inf }
 0x3ff   : > { %853 = vmax.xlane.f32.xlu0 %v852_v3  ;;  %v840_v4 = vpop.f32.mrb[10].mxu0 }
 0x400   : > { %v1603_v5 = vpop.f32.mrb[11].mxu0 }
 0x40c   : > { %626 = vrot.lane.b32.xlu1 %v2268_v25, %s1988_s27  ;;  %s1385_s27 = sshll.u32 %s482_s15, 4  ;;  %s2395_s27 = int_to_ptr.vmem [resolvable:$true] %s1385_s27 }
 0x40d   : > { %s1898_s28 = scalar_lea.vmem %s2395_s27, 128 }
 0x40e   : > { %p1899_p2 = scmp.ne.s32.totalorder %s2395_s27, %s1898_s28 }
 0x410   : > { %641 = vrot.lane.b32.xlu1 %v2268_v25, %s1989_s14  ;;  %p1900_p4 = pnand %p1899_p2, %p2480_p3 }
 0x412   : > { %p1901_p7 = pneg %p1900_p4 }
 0x415   : > { %611 = vrot.lane.b32.xlu0 %v2268_v25, %s1990_s22 }
 0x480   : > { %v845_v6 = vpop.xlane.xlu1 %844 }
 0x481   : > { %v855_v7 = vsub.f32 %v699_v49, %v845_v6 }
 0x483   : > { %v859_v9 = vmul.f32 1.442695, %v855_v7 }
 0x484   : > { %v848_v10 = vpop.xlane.xlu0 %847 }
 0x485   : > { %1764 = vpow2.f32 %v859_v9  ;;  %v856_v11 = vsub.f32 %v745_v54, %v848_v10 }
 0x487   : > { %v861_v12 = vmul.f32 1.442695, %v856_v11 }
 0x488   : > { %v851_v13 = vpop.xlane.xlu1 %850 }
 0x489   : > { %1766 = vpow2.f32 %v861_v12  ;;  %v857_v14 = vsub.f32 %v791_v59, %v851_v13 }
 0x48b   : > { %v863_v15 = vmul.f32 1.442695, %v857_v14 }
 0x48c   : > { %v627_v16 = vpop.permute.xlu1 %626  ;;  %v854_v17 = vpop.xlane.xlu0 %853 }
 0x48d   : > { %1768 = vpow2.f32 %v863_v15  ;;  %630 = vst.msk [vmem:[#allocation4 + $0x8] sm:$0xf] %vm588_vm2, %v627_v16  ;;  %v858_v18 = vsub.f32 %v837_v1, %v854_v17  ;;  %v1517_v16 = vld [vmem:[#allocation11] ss:$0 sm:$0xff] }
 0x48f   : > { %v1765_v19 = vpop.eup %1764  ;;  %v865_v20 = vmul.f32 1.442695, %v858_v18 }
 0x490   : > { %v642_v21 = vpop.permute.xlu1 %641  ;;  %v612_v22 = vpop.permute.xlu0 %611  ;;  %v883_v23 = vpack.c.bf16 %v1765_v19, %v1765_v19  ;;  %v867_v38 = vsel %vm658_vm3, %v1765_v19, 0.0 }
 0x491   : > { %1770 = vpow2.f32 %v865_v20  ;;  %645 = vst.msk [vmem:[#allocation4 + $0xc] sm:$0xf] %vm588_vm2, %v642_v21  ;;  %615 = vst.msk [vmem:[#allocation4 + $0x4] sm:$0xf] %vm588_vm2, %v612_v22  ;;  %v1523_v20 = vld [vmem:[%s2448_s12] ss:$0 sm:$0xff] }
 0x492   : > { %1607 = vmatmul.mubr.msk.bf16.vlgmr.msra.gmra.mrb[8].mxu1 %vm658_vm3, %v883_v23 }
 0x493   : > { %v1767_v24 = vpop.eup %1766  ;;  %1618 = vmatprep.mubr.msk.bf16.mxu1 %vm1979_vm1, %v1978_v8 }
 0x494   : > { %v870_v25 = vsel %vm658_vm3, %v1767_v24, 0.0  ;;  %v656_v26 = vld [vmem:[#allocation4 + $0x8] sm:$0xf]  ;;  %v884_v35 = vpack.c.bf16 %v1767_v24, %v1767_v24 }
 0x495   : > { %871 = vadd.xlane.f32.xlu0 %v870_v25  ;;  %v984_v27 = vsel %vm890_vm4, %v656_v26, 0 }
 0x496   : > { %1617 = vmatpush3.bf16.msra.mxu1 %v984_v27 }
 0x497   : > { %v1769_v28 = vpop.eup %1768  ;;  %1628 = vmatprep.subr.bf16.mxu1 %v1978_v8 }
 0x498   : > { %v873_v29 = vsel %vm658_vm3, %v1769_v28, 0.0  ;;  %v655_v30 = vld [vmem:[#allocation4 + $0x4] sm:$0xf]  ;;  %v885_v31 = vpack.c.bf16 %v1769_v28, %v1769_v28  ;;  %v657_v33 = vld [vmem:[#allocation4 + $0xc] sm:$0xf] }
 0x499   : > { %874 = vadd.xlane.f32.xlu1 %v873_v29  ;;  %v938_v32 = vsel %vm890_vm4, %v655_v30, 0  ;;  %v1030_v37 = vsel %vm890_vm4, %v657_v33, 0 }
 0x49a   : > { %1611 = vmatpush3.bf16.msra.mxu0 %v938_v32  ;;  %1619 = vmatmul.mubr.msk.bf16.vlgmr.msra.gmra.mrb[12].mxu1 %vm658_vm3, %v885_v31  ;;  %v1756_v31 = vld [vmem:[%s2445_s9] sm:$0xff]  }
 0x49b   : > { %v1771_v34 = vpop.eup %1770  ;;  %1622 = vmatprep.subr.bf16.mxu0 %v1978_v8  ;;  %1632 = vmatprep.mubr.msk.bf16.mxu1 %vm1979_vm1, %v1978_v8 }
 0x49c   : > { %v876_v36 = vsel %vm658_vm3, %v1771_v34, 0.0  ;;  %v886_v39 = vpack.c.bf16 %v1771_v34, %v1771_v34  ;;  %1629 = vmatpush3.bf16.msra.mxu1 %v1754_v56 }
 0x49d   : > { %877 = vadd.xlane.f32.xlu0 %v876_v36  ;;  %1613 = vmatmul.mubr.msk.bf16.vlgmr.msra.gmra.mrb[12].mxu0 %vm658_vm3, %v884_v35  ;;  %v1521_v36 = vld [vmem:[#allocation13] ss:$0 sm:$0xff] }
 0x49e   : > { %1623 = vmatpush3.bf16.msra.mxu0 %v1030_v37  ;;  %1624 = vmatprep.mubr.msk.bf16.mxu0 %vm1979_vm1, %v1978_v8 }
 0x49f   : > { %1636 = vmatprep.subr.bf16.mxu0 %v1978_v8  ;;  %1630 = vmatprep.subr.bf16.mxu1 %v1978_v8 }
 0x4a0   : > { %1631 = vmatpush3.bf16.msra.mxu1 %v1755_v63 }
 0x4a1   : > { %868 = vadd.xlane.f32.xlu0 %v867_v38  ;;  %1644 = vmatprep.subr.bf16.mxu1 %v1978_v8  ;;  %v1522_v38 = vld [vmem:[#allocation14] ss:$0 sm:$0xff] }
 0x4a5   : > { %1625 = vmatmul.mubr.msk.bf16.vlgmr.msra.gmra.mrb[16].mxu0 %vm658_vm3, %v886_v39 }
 0x4a6   : > { %1640 = vmatprep.mubr.msk.bf16.mxu0 %vm1979_vm1, %v1978_v8  ;;  %1637 = vmatpush3.bf16.msra.mxu0 %v1756_v31 }
 0x4a7   : > { %1638 = vmatprep.subr.bf16.mxu0 %v1978_v8 }
 0x522   : > { %v872_v40 = vpop.xlane.xlu0 %871 }
 0x526   : > { %v875_v43 = vpop.xlane.xlu1 %874 }
 0x52a   : > { %v878_v41 = vpop.xlane.xlu0 %877 }
 0x52e   : > { %v869_v42 = vpop.xlane.xlu0 %868 }
 0x52f   : > { %1772 = vrcp.f32 %v869_v42 }
 0x530   : > { %1774 = vrcp.f32 %v875_v43  ;;  %v1758_v43 = vld [vmem:[%s2447_s11] sm:$0xff]  }
 0x531   : > { %1776 = vrcp.f32 %v872_v40 }
 0x532   : > { %1778 = vrcp.f32 %v878_v41 }
 0x539   : > { %v1773_v44 = vpop.eup %1772 }
 0x53a   : > { %v1775_v51 = vpop.eup %1774 }
 0x53b   : > { %v1777_v57 = vpop.eup %1776 }
 0x53c   : > { %v1779_v4 = vpop.eup %1778 }
 0x565   : > { %v928_v45 = vpop.f32.mrb[8].mxu1 }
 0x566   : > { %v1072_v46 = vmul.f32 %v1773_v44, %v928_v45  ;;  %v1608_v47 = vpop.f32.mrb[9].mxu1  ;;  %v1759_v44 = vld [vmem:[%s2447_s11 + $0x8] sm:$0xff]   ;;  %v1760_v45 = vld [vmem:[%s2447_s11 + $0x10] sm:$0xff]  }
 0x567   : > { %v931_v48 = vpop.f32.mrb[10].mxu1  ;;  %v1524_v47 = vld [vmem:[%s2446_s10] ss:$0 sm:$0xff] }
 0x568   : > { %v1076_v49 = vpack.c.bf16 %v1072_v46, %v1072_v46  ;;  %v1609_v50 = vpop.f32.mrb[11].mxu1  ;;  %v1761_v46 = vld [vmem:[%s2447_s11 + $0x18] sm:$0xff]  }
 0x56a   : > { %1080 = vst.msk [vmem:[#allocation5] sm:$0xf] %vm588_vm2, %v1076_v49 }
 0x56d   : > { %v1020_v52 = vpop.f32.mrb[12].mxu1 }
 0x56e   : > { %v1074_v53 = vmul.f32 %v1775_v51, %v1020_v52  ;;  %v1620_v54 = vpop.f32.mrb[13].mxu1 }
 0x56f   : > { %v1023_v55 = vpop.f32.mrb[14].mxu1 }
 0x570   : > { %v1540_v58 = vpack.c.bf16 %v1074_v53, %v1074_v53  ;;  %v974_v59 = vpop.f32.mrb[12].mxu0  ;;  %v1621_v60 = vpop.f32.mrb[15].mxu1 }
 0x571   : > { %v1073_v61 = vmul.f32 %v1777_v57, %v974_v59  ;;  %v1614_v62 = vpop.f32.mrb[13].mxu0 }
 0x572   : > { %1092 = vrot.lane.b32.xlu0 %v1540_v58, %s1991_s17  ;;  %v977_v1 = vpop.f32.mrb[14].mxu0  ;;  %s1902_s17 = sshll.u32 %s1994_s29, 4  ;;  %s1903_s17 = int_to_ptr.vmem [resolvable:$false] %s1902_s17 }
 0x573   : > { %v1539_v2 = vpack.c.bf16 %v1073_v61, %v1073_v61  ;;  %v1615_v3 = vpop.f32.mrb[15].mxu0  ;;  %p1905_p8 = scmp.lt.s32.totalorder %s2395_s27, %s1903_s17 }
 0x575   : > { %1084 = vrot.lane.b32.xlu1 %v1539_v2, %s1992_s19  ;;  %s1904_s19 = scalar_lea.vmem %s1903_s17, 256 }
 0x576   : > { %p1906_p11 = scmp.lt.s32.totalorder %s1904_s19, %s1898_s28 }
 0x578   : > { %v1066_v5 = vpop.f32.mrb[16].mxu0  ;;  %p1907_p13 = por %p1906_p11, %p1905_p8 }
 0x579   : > { %v1075_v6 = vmul.f32 %v1779_v4, %v1066_v5  ;;  %v1626_v7 = vpop.f32.mrb[17].mxu0 }
 0x57a   : > { %v1069_v9 = vpop.f32.mrb[18].mxu0  ;;  %p1908_p1 = pnand %p1907_p13, %p1901_p7 }
 0x57b   : > { %v1541_v10 = vpack.c.bf16 %v1075_v6, %v1075_v6  ;;  %v1627_v11 = vpop.f32.mrb[19].mxu0 }
 0x57d   : > { %1100 = vrot.lane.b32.xlu1 %v1541_v10, %s1993_s20 }
 0x5e4   : > { %v1093_v13 = vpop.permute.xlu0 %1092 }
 0x5e7   : > { %v1085_v12 = vpop.permute.xlu1 %1084 }
 0x5e8   : > { %1088 = vst.msk [vmem:[#allocation5] sm:$0xf] %vm1087_vm5, %v1085_v12 }
 0x5e9   : > { %1096 = vst.msk [vmem:[#allocation5] sm:$0xf] %vm1095_vm6, %v1093_v13 }
 0x5ef   : > { %v1101_v14 = vpop.permute.xlu1 %1100 }
 0x5f0   : > { %1104 = vst.msk [vmem:[#allocation5] sm:$0xf] %vm1103_vm7, %v1101_v14 }
 0x5f7   : > { %v1105_v15 = vld [vmem:[#allocation5] sm:$0xf] }
 0x5f8   : > { %1633 = vmatmul.mubr.msk.bf16.vlgmr.msra.gmra.mrb[16].mxu1 %vm491_vm0, %v1105_v15 }
 0x5f9   : > { %1652 = vmatprep.mubr.msk.bf16.mxu1 %vm1979_vm1, %v1978_v8  ;;  %1645 = vmatpush3.bf16.msra.mxu1 %v1758_v43 }
 0x5fa   : > { %1646 = vmatprep.subr.bf16.mxu1 %v1978_v8 }
 0x5fd   : > { %1647 = vmatpush3.bf16.msra.mxu1 %v1759_v44 }
 0x5fe   : > { %1648 = vmatprep.subr.bf16.mxu1 %v1978_v8 }
 0x601   : > { %1649 = vmatpush3.bf16.msra.mxu1 %v1760_v45 }
 0x602   : > { %1650 = vmatprep.subr.bf16.mxu1 %v1978_v8 }
 0x605   : > { %1651 = vmatpush3.bf16.msra.mxu1 %v1761_v46 }
 0x6cb   : > { %v1166_v17 = vpop.f32.mrb[16].mxu1 }
 0x6cc   : > { %v1167_v18 = vadd.f32 %v1517_v16, %v1166_v17  ;;  %v1634_v19 = vpop.f32.mrb[17].mxu1 }
 0x6cd   : > { %v1169_v21 = vpop.f32.mrb[18].mxu1 }
 0x6ce   : > { %v1173_v22 = vadd.f32 %v1167_v18, %v2239_v0  ;;  %v1635_v23 = vpop.f32.mrb[19].mxu1  ;;  %v1757_v0 = vld [vmem:[%s2445_s9 + $0x8] sm:$0xff]  }
 0x6cf   : > { %1639 = vmatpush3.bf16.msra.mxu0 %v1757_v0 }
 0x6d0   : > { %v1213_v24 = vadd.f32 %v1523_v20, %v1173_v22  ;;  %v1176_v25 = vsel %vm491_vm0, %v1173_v22, 0.0 }
 0x6d1   : > { %1177 = vadd.xlane.f32.xlu1 %v1176_v25 }
 0x6d2   : > { %1214 = vst.msk [vmem:[#allocation7] sm:$0xff] %vm491_vm0, %v1213_v24 }
 0x6d9   : > { %v1289_v58 = vld [vmem:[#allocation7] sm:$0xff] }
 0x75e   : > { %v1178_v26 = vpop.xlane.xlu1 %1177 }
 0x75f   : > { %v1179_v27 = vmul.f32 0.03125, %v1178_v26 }
 0x761   : > { %v1180_v28 = vsub.f32 %v1173_v22, %v1179_v27 }
 0x763   : > { %v1181_v29 = vmul.f32 %v1180_v28, %v1180_v28 }
 0x765   : > { %v1182_v30 = vsel %vm491_vm0, %v1181_v29, 0.0 }
 0x766   : > { %1183 = vadd.xlane.f32.xlu0 %v1182_v30 }
 0x7f3   : > { %v1184_v32 = vpop.xlane.xlu0 %1183 }
 0x7f4   : > { %v1185_v33 = vmul.f32 0.03125, %v1184_v32 }
 0x7f6   : > { %v1186_v34 = vadd.f32 1e-05, %v1185_v33 }
 0x7f8   : > { %1780 = vrsqrt.f32 %v1186_v34 }
 0x802   : > { %v1781_v35 = vpop.eup %1780 }
 0x803   : > { %v1188_v37 = vmul.f32 %v1781_v35, %v1180_v28 }
 0x805   : > { %v1195_v39 = vmul.f32 %v1521_v36, %v1188_v37 }
 0x807   : > { %v1202_v40 = vadd.f32 %v1522_v38, %v1195_v39 }
 0x809   : > { %v1203_v41 = vpack.c.bf16 %v1202_v40, %v1202_v40 }
 0x80b   : > { %1205 = vst.msk [vmem:[#allocation6] sm:$0xf] %vm1204_vm8, %v1203_v41 }
 0x812   : > { %v1215_v42 = vld [vmem:[#allocation6] sm:$0xf] }
 0x813   : > { %1641 = vmatmul.mubr.msk.bf16.vlgmr.msra.gmra.mrb[20].mxu0 %vm491_vm0, %v1215_v42 }
 0x8e6   : > { %v1276_v48 = vpop.f32.mrb[20].mxu0 }
 0x8e7   : > { %v1277_v49 = vadd.f32 %v1524_v47, %v1276_v48  ;;  %v1642_v50 = vpop.f32.mrb[21].mxu0 }
 0x8e8   : > { %v1279_v51 = vpop.f32.mrb[22].mxu0 }
 0x8e9   : > { %v1528_v52 = vmul.f32 -1.442695, %v1277_v49  ;;  %v1643_v53 = vpop.f32.mrb[23].mxu0 }
 0x8eb   : > { %1782 = vpow2.f32 %v1528_v52 }
 0x8f5   : > { %v1783_v54 = vpop.eup %1782 }
 0x8f6   : > { %v1285_v55 = vadd.f32 1.0, %v1783_v54 }
 0x8f8   : > { %1784 = vrcp.f32 %v1285_v55 }
 0x902   : > { %v1785_v8 = vpop.eup %1784 }
 0x903   : > { %v1288_v56 = vmul.f32 %v1785_v8, %v1277_v49 }
 0x905   : > { %v1290_v57 = vpack.c.bf16 %v1288_v56, %v1288_v56 }
 0x907   : > { %1653 = vmatmul.mubr.msk.bf16.vlgmr.msra.gmra.mrb[20].mxu1 %vm1323_vm9, %v1290_v57 }
 0x9da   : > { %v1361_v59 = vpop.f32.mrb[20].mxu1 }
 0x9db   : > { %v1367_v60 = vadd.f32 %v1361_v59, %v1289_v58  ;;  %v1654_v61 = vpop.f32.mrb[21].mxu1 }
 0x9dc   : > { %v1364_v62 = vpop.f32.mrb[22].mxu1 }
 0x9dd   : > { %1368 = vst.msk [vmem:[#allocation7] sm:$0xff] %vm491_vm0, %v1367_v60  ;;  %v1655_v63 = vpop.f32.mrb[23].mxu1 }
 0x9e4   : > { %v1369_v1 = vld [vmem:[#allocation7] sm:$0xff] }
 0x9e5   : > { %1370 = vst.msk [vmem:[%s482_s15] sm:$0xff] %vm491_vm0, %v1369_v1 }
 0x9e6   : > { %1911 = shalt.err (!%p1908_p1)
}
 0x9e7   : > { %s1912_s20 = scalar_lea.hbm %s2393_s13, 128  ;;  %s1916_s25 = scalar_lea.hbm %s2479_s24, 256 }
 0x9e8   : > { %p1913_p0 = scmp.ne.s32.totalorder %s2393_s13, %s1912_s20  ;;  %p1917_p9 = scmp.lt.u32.totalorder %s2393_s13, %s2479_s24 }
 0x9e9   : > { %p1918_p12 = scmp.lt.u32.totalorder %s1916_s25, %s1912_s20  ;;  %p1920_p2 = scmp.lt.u32.totalorder %s1912_s20, %s2393_s13 }
 0x9ea   : > { %p1914_p6 = pnand %p1913_p0, %p2480_p3 }
 0x9eb   : > { %p1919_p10 = por %p1918_p12, %p1917_p9 }
 0x9ec   : > { %p1915_p5 = pneg %p1914_p6 }
 0x9ed   : > { %p1921_p4 = por %p1920_p2, %p1919_p10 }
 0x9ef   : > { %p1922_p7 = pnand %p1921_p4, %p1915_p5 }
 0x9f1   : > { %1925 = shalt.err (!%p1922_p7)
}
 0x9f2   : > { %1672 = dma.vmem_to_hbm [thread:$0]  (%p2480_p3), %s2395_s27, 128, %s2393_s13, %s1372_s16  }
 0x9f3 PF: > { %s2481_s14 = sld [smem:[#allocation23_spill]]  ;;  %s2482_s22 = sld [smem:[#allocation21_spill]] }
 0x9f4   : > { %s2483_s28 = sld [smem:[#allocation26_spill]] }
 0x9f9   : > { %p1699_p8 = scmp.ge.s32.totalorder %s2481_s14, 2  ;;  %s1397_s29 = sand.u32 1, %s2482_s22  }
 0x9fa   : > { %p2484_p11 = scmp.ne.s32.totalorder %s2483_s28, 0  ;;  %s1398_s17 = scalar_lea.sflag [#allocation10], %s1397_s29 }
 0x9fc   : > { %p1688_p13 = pnand %p1699_p8, %p2484_p11 }
 0x9fe   : > { %1955 = dma.done.wait (!%p1688_p13), %s1398_s17, 128  }
 0x9ff   : > { %1957 = vsyncadd (!%p1688_p13), %s1398_s17, 4294967168  ;;  %s2485_s28 = sld [smem:[#allocation24_spill]]  ;;  %s2486_s19 = sld [smem:[#allocation22_spill]] }
 0xa00   : > { %s2487_s27 = sld [smem:[#allocation25_spill]]  ;;  %s2488_s25 = smov %s1964_s26 }
 0xa05   : > { %p26_p1 = scmp.ge.s32.totalorder %s2485_s28, 4   ;;  %s2489_s26 = smov %s2486_s19 }
 0xa07   :  { %28 = sbr.rel (!%p26_p1) target bundleno = 8 (0x8), region = 133 }
 0xa0e   :  { %1403 = vsyncpa [#allocation9], 1 }
 0xa0f   :  { %1405 = vsyncpa [#allocation9 + $0x1], 1 }
 0xa10   :  { %1406 = vsyncpa [#allocation12], 1 }
 0xa11   :  { %1407 = vsyncpa [#allocation15], 1 }
 0xa12   :  { %1408 = vsyncpa [#allocation10], 1 }
 0xa13   :  { %1410 = vsyncpa [#allocation10 + $0x1], 1 }

</bundles_post_ra>
